<compile_context>
chip_gen: v6e
topology: v6e:2x2x1
jax: 0.10.0
libtpu: 0.0.40
codegen_flags: <defaults>
</compile_context>

<pallas_src>
import jax
import jax.numpy as jnp
from jax import lax
from jax.experimental import pallas as pl
from jax.experimental.pallas import tpu as pltpu

_LANE = 128


def _round_up(x, m):
    return (x + m - 1) // m * m


def _pad_axis(a, axis, new_size):
    if a.shape[axis] == new_size:
        return a
    pads = [(0, 0)] * a.ndim
    pads[axis] = (0, new_size - a.shape[axis])
    return jnp.pad(a, pads)


def _bottleneck_kernel(x_ref, w1_ref, s1_ref, b1_ref,
                       w2_ref, s2_ref, b2_ref,
                       w3_ref, s3_ref, b3_ref,
                       o_ref, pad_ref, col_ref):
    # x_ref : (1, 1, TH+2, W, Cp)  bf16  halo row-tile of the input image
    # w1_ref: (Cp, Wp)    bf16   1x1 conv1 weight (ci, co), channel-padded
    # w2_ref: (9*Wp, Wp)  bf16   3x3 conv2 weight, im2col layout ((ky,kx,ci), co)
    # w3_ref: (Wp, Cp)    bf16   1x1 conv3 weight (ci, co)
    # s*/b* : (1, C)      f32    folded BatchNorm scale / shift
    # o_ref : (1, TH, W, Cp) f32 output row-tile
    # pad_ref: (TH+2, W+2, Wp) f32  W-padded conv2 input scratch
    # col_ref: (TH*W, 9*Wp)   bf16  im2col scratch
    TH2, W, Cp = x_ref.shape[2], x_ref.shape[3], x_ref.shape[4]
    TH = TH2 - 2
    Wp = w1_ref.shape[1]
    Cop = w3_ref.shape[1]
    r = pl.program_id(1)
    H = pl.num_programs(1) * TH          # full image height

    x = x_ref[0, 0]                      # (TH+2, W, Cp) bf16

    # ---- conv1 (1x1) + bn1 + relu, computed over the TH+2 halo rows ----
    h1 = jnp.dot(x.reshape(TH2 * W, Cp), w1_ref[...],
                 preferred_element_type=jnp.float32)
    h1 = jnp.maximum(h1 * s1_ref[...] + b1_ref[...], 0.0)
    h1 = h1.reshape(TH2, W, Wp)

    # Halo rows outside the image act as conv2's zero padding -> mask to zero.
    g = (r * TH - 1) + lax.broadcasted_iota(jnp.int32, (TH2, 1, 1), 0)
    h1 = jnp.where(jnp.logical_and(g >= 0, g < H), h1, 0.0)

    # ---- conv2 (3x3, pad=1, stride=1) + bn2 + relu via one im2col matmul ----
    zcol = jnp.zeros((TH2, 1, Wp), jnp.float32)
    pad_ref[:, 0:1, :] = zcol                     # only the border columns are
    pad_ref[:, W + 1:W + 2, :] = zcol             # zeroed (no full re-zero)
    pad_ref[:, 1:W + 1, :] = h1                   # interior fully rewritten

    for ky in range(3):                           # static unroll: 9 window copies
        for kx in range(3):
            t = ky * 3 + kx
            col_ref[:, t * Wp:(t + 1) * Wp] = (
                pad_ref[ky:ky + TH, kx:kx + W, :]
                .reshape(TH * W, Wp).astype(jnp.bfloat16))
    h2 = jnp.dot(col_ref[...], w2_ref[...], preferred_element_type=jnp.float32)
    h2 = jnp.maximum(h2 * s2_ref[...] + b2_ref[...], 0.0)

    # ---- conv3 (1x1) + bn3 + residual add + relu ----
    h3 = jnp.dot(h2.astype(jnp.bfloat16), w3_ref[...],
                 preferred_element_type=jnp.float32)
    res = x[1:TH + 1].reshape(TH * W, Cp).astype(jnp.float32)   # identity rows
    h3 = h3 * s3_ref[...] + b3_ref[...] + res
    o_ref[0] = jnp.maximum(h3, 0.0).reshape(TH, W, Cop).astype(o_ref.dtype)


def bottleneck_forward(x_nchw, w1, s1, b1, w2, s2, b2, w3, s3, b3, tile_h=None):
    """x_nchw: (N, Cin, H, W) float32.  Returns (N, Cout, H, W) float32."""
    # TODO(synk): for multi-block networks keep activations NHWC end-to-end to
    # avoid these HBM-round-trip transposes (PyTorch-layout glue only).
    x = jnp.transpose(x_nchw, (0, 2, 3, 1)).astype(jnp.float32)   # NHWC
    N, H, W, Cin = x.shape
    width = w1.shape[1]
    Cout = w3.shape[1]
    assert Cin == Cout, "identity residual requires in_channel == out_channel*4"

    Cp = _round_up(Cin, _LANE)      # lane-dense channel dims
    Wp = _round_up(width, _LANE)

    if tile_h is None:
        # Row tile: >=2 row tiles when possible (pipeline depth / megacore);
        # re-derive for real shapes so the per-step VMEM footprint stays small.
        tile_h = 8 if (H % 8 == 0 and H > 8) else H
    assert H % tile_h == 0
    TH, R = tile_h, H // tile_h

    # bf16 MXU operands with zero-padded channels (padded channels stay exactly
    # zero through conv/BN/ReLU because their weights/scales/shifts are zero).
    xq = _pad_axis(x, 3, Cp).astype(jnp.bfloat16)
    w1p = _pad_axis(_pad_axis(w1, 0, Cp), 1, Wp).astype(jnp.bfloat16)
    w2p = _pad_axis(_pad_axis(w2, 2, Wp), 3, Wp)
    w2col = w2p.reshape(9 * Wp, Wp).astype(jnp.bfloat16)   # ((ky,kx,ci), co)
    w3p = _pad_axis(_pad_axis(w3, 0, Wp), 1, Cp).astype(jnp.bfloat16)
    s1p, b1p = _pad_axis(s1, 1, Wp), _pad_axis(b1, 1, Wp)
    s2p, b2p = _pad_axis(s2, 1, Wp), _pad_axis(b2, 1, Wp)
    s3p, b3p = _pad_axis(s3, 1, Cp), _pad_axis(b3, 1, Cp)

    # Row tiles with a 1-row halo on each side (wrapper glue; halo rows that
    # fall outside the image are masked to zero inside the kernel).
    xh = jnp.pad(xq, ((0, 0), (1, 1), (0, 0), (0, 0)))
    x_tiles = jnp.stack([xh[:, r * TH:r * TH + TH + 2] for r in range(R)],
                        axis=1)                     # (N, R, TH+2, W, Cp)

    full = lambda a: pl.BlockSpec(a.shape, lambda n, r: (0,) * a.ndim)
    # TODO(synk): the weight/scale specs are grid-invariant; pl.Buffered(1) (or
    # a one-shot scratch load) would halve their double-buffer VMEM on v7x.

    out_nhwc = pl.pallas_call(
        _bottleneck_kernel,
        out_shape=jax.ShapeDtypeStruct((N, H, W, Cp), jnp.float32),
        grid_spec=pltpu.PrefetchScalarGridSpec(
            num_scalar_prefetch=0,
            grid=(N, R),
            in_specs=[
                pl.BlockSpec((1, 1, TH + 2, W, Cp),
                             lambda n, r: (n, r, 0, 0, 0)),
                full(w1p), full(s1p), full(b1p),
                full(w2col), full(s2p), full(b2p),
                full(w3p), full(s3p), full(b3p),
            ],
            out_specs=pl.BlockSpec((1, TH, W, Cp), lambda n, r: (n, r, 0, 0)),
            scratch_shapes=[
                pltpu.VMEM((TH + 2, W + 2, Wp), jnp.float32),   # padded conv2 in
                pltpu.VMEM((TH * W, 9 * Wp), jnp.bfloat16),     # im2col buffer
            ],
        ),
        compiler_params=pltpu.CompilerParams(
            dimension_semantics=("parallel", "parallel"),
            vmem_limit_bytes=32 * 1024 * 1024),
    )(x_tiles, w1p, s1p, b1p, w2col, s2p, b2p, w3p, s3p, b3p)

    out_nhwc = out_nhwc[..., :Cout]                 # drop padded channels
    return jnp.transpose(out_nhwc, (0, 3, 1, 2))


def _fold_bn(gamma, beta, mean, var, eps=1e-5):
    scale = gamma / jnp.sqrt(var + eps)
    shift = beta - mean * scale
    return scale.reshape(1, -1), shift.reshape(1, -1)


def _reference(x_nhwc, w1, s1, b1, w2, s2, b2, w3, s3, b3):
    dn = ('NHWC', 'HWIO', 'NHWC')
    h = lax.conv_general_dilated(x_nhwc, w1[None, None], (1, 1), 'VALID',
                                 dimension_numbers=dn)
    h = jnp.maximum(h * s1 + b1, 0.0)
    h = lax.conv_general_dilated(h, w2, (1, 1), ((1, 1), (1, 1)),
                                 dimension_numbers=dn)
    h = jnp.maximum(h * s2 + b2, 0.0)
    h = lax.conv_general_dilated(h, w3[None, None], (1, 1), 'VALID',
                                 dimension_numbers=dn)
    h = h * s3 + b3 + x_nhwc
    return jnp.maximum(h, 0.0)


if __name__ == "__main__":
    key = jax.random.PRNGKey(0)

    # Bottleneck(in_channel=16, out_channel=4, stride=1, downsample=None,
    #            groups=1, width_per_group=64)  =>  width=4, Cout=16 (== Cin)
    N, Cin, H, W = 2, 16, 16, 16
    out_channel = 4
    expansion = 4
    width = out_channel                 # * (64/64) * 1
    Cout = out_channel * expansion      # == Cin so identity add is valid

    ks = jax.random.split(key, 8)
    x_nchw = jax.random.normal(ks[0], (N, Cin, H, W), jnp.float32)

    w1 = 0.1 * jax.random.normal(ks[1], (Cin, width), jnp.float32)
    w2 = 0.1 * jax.random.normal(ks[2], (3, 3, width, width), jnp.float32)
    w3 = 0.1 * jax.random.normal(ks[3], (width, Cout), jnp.float32)

    def bn_params(k, c):
        k1, k2, k3, k4 = jax.random.split(k, 4)
        gamma = 1.0 + 0.1 * jax.random.normal(k1, (c,), jnp.float32)
        beta = 0.1 * jax.random.normal(k2, (c,), jnp.float32)
        mean = 0.1 * jax.random.normal(k3, (c,), jnp.float32)
        var = 0.5 + jnp.abs(jax.random.normal(k4, (c,), jnp.float32))
        return _fold_bn(gamma, beta, mean, var)

    s1, b1 = bn_params(ks[4], width)
    s2, b2 = bn_params(ks[5], width)
    s3, b3 = bn_params(ks[6], Cout)

    out = bottleneck_forward(x_nchw, w1, s1, b1, w2, s2, b2, w3, s3, b3)
    out = jax.block_until_ready(out)

    # Cross-check against a pure-JAX reference using the same bf16 quantization
    # of x / weights that the kernel feeds to the MXU (intermediates stay f32 in
    # the reference, hence the bf16-level tolerance).
    q = lambda a: a.astype(jnp.bfloat16).astype(jnp.float32)
    x_nhwc = q(jnp.transpose(x_nchw, (0, 2, 3, 1)))
    ref = _reference(x_nhwc, q(w1), s1, b1, q(w2), s2, b2, q(w3), s3, b3)
    ref = jnp.transpose(ref, (0, 3, 1, 2))
    assert out.shape == (N, Cout, H, W)
    assert jnp.allclose(out, ref, atol=2e-2, rtol=2e-2), "mismatch vs reference"

    print("KERNEL_OK")
</pallas_src>

<mosaic_0001>
module attributes {stable_mosaic.version = 11 : i64} {
  func.func @_bottleneck_kernel(%arg0: i32, %arg1: i32, %arg2: memref<1x1x10x16x128xbf16, #tpu.memory_space<vmem>>, %arg3: memref<128x128xbf16, #tpu.memory_space<vmem>>, %arg4: memref<1x128xf32, #tpu.memory_space<vmem>>, %arg5: memref<1x128xf32, #tpu.memory_space<vmem>>, %arg6: memref<1152x128xbf16, #tpu.memory_space<vmem>>, %arg7: memref<1x128xf32, #tpu.memory_space<vmem>>, %arg8: memref<1x128xf32, #tpu.memory_space<vmem>>, %arg9: memref<128x128xbf16, #tpu.memory_space<vmem>>, %arg10: memref<1x128xf32, #tpu.memory_space<vmem>>, %arg11: memref<1x128xf32, #tpu.memory_space<vmem>>, %arg12: memref<1x8x16x128xf32, #tpu.memory_space<vmem>>, %arg13: memref<10x18x128xf32, #tpu.memory_space<vmem>>, %arg14: memref<128x1152xbf16, #tpu.memory_space<vmem>>) attributes {dimension_semantics = [#tpu.dimension_semantics<parallel>, #tpu.dimension_semantics<parallel>], iteration_bounds = array<i64: 2, 2>, scalar_prefetch = 0 : i64, scratch_operands = 2 : i64, tpu.core_type = #tpu.core_type<tc>, window_params = [{transform_indices = @transform_0, window_bounds = array<i64: 1, 1, 10, 16, 128>}, {pipeline_mode = #tpu.pipeline_mode<synchronous>, transform_indices = @transform_1, window_bounds = array<i64: 128, 128>}, {pipeline_mode = #tpu.pipeline_mode<synchronous>, transform_indices = @transform_2, window_bounds = array<i64: 1, 128>}, {pipeline_mode = #tpu.pipeline_mode<synchronous>, transform_indices = @transform_3, window_bounds = array<i64: 1, 128>}, {pipeline_mode = #tpu.pipeline_mode<synchronous>, transform_indices = @transform_4, window_bounds = array<i64: 1152, 128>}, {pipeline_mode = #tpu.pipeline_mode<synchronous>, transform_indices = @transform_5, window_bounds = array<i64: 1, 128>}, {pipeline_mode = #tpu.pipeline_mode<synchronous>, transform_indices = @transform_6, window_bounds = array<i64: 1, 128>}, {pipeline_mode = #tpu.pipeline_mode<synchronous>, transform_indices = @transform_7, window_bounds = array<i64: 128, 128>}, {pipeline_mode = #tpu.pipeline_mode<synchronous>, transform_indices = @transform_8, window_bounds = array<i64: 1, 128>}, {pipeline_mode = #tpu.pipeline_mode<synchronous>, transform_indices = @transform_9, window_bounds = array<i64: 1, 128>}, {transform_indices = @transform_10, window_bounds = array<i64: 1, 8, 16, 128>}]} {
    %c0 = arith.constant 0 : index
    %c0_0 = arith.constant 0 : index
    %c0_1 = arith.constant 0 : index
    %c0_2 = arith.constant 0 : index
    %c0_3 = arith.constant 0 : index
    %0 = vector.load %arg2[%c0, %c0_0, %c0_1, %c0_2, %c0_3] : memref<1x1x10x16x128xbf16, #tpu.memory_space<vmem>>, vector<1x1x10x16x128xbf16>
    %1 = vector.shape_cast %0 : vector<1x1x10x16x128xbf16> to vector<10x16x128xbf16>
    %2 = vector.shape_cast %1 : vector<10x16x128xbf16> to vector<160x128xbf16>
    %c0_4 = arith.constant 0 : index
    %c0_5 = arith.constant 0 : index
    %3 = vector.load %arg3[%c0_4, %c0_5] : memref<128x128xbf16, #tpu.memory_space<vmem>>, vector<128x128xbf16>
    %cst = arith.constant dense<0.000000e+00> : vector<160x128xf32>
    %4 = tpu.matmul %2, %3, %cst {dimension_numbers = #tpu.dot_dimension_numbers<[1], [0], [0], [1], [0, 0, 1, 1], [], []>} : vector<160x128xbf16>, vector<128x128xbf16>, vector<160x128xf32> -> vector<160x128xf32>
    %c0_6 = arith.constant 0 : index
    %c0_7 = arith.constant 0 : index
    %5 = vector.load %arg4[%c0_6, %c0_7] : memref<1x128xf32, #tpu.memory_space<vmem>>, vector<1x128xf32>
    %6 = vector.broadcast %5 : vector<1x128xf32> to vector<160x128xf32>
    %7 = arith.mulf %4, %6 : vector<160x128xf32>
    %c0_8 = arith.constant 0 : index
    %c0_9 = arith.constant 0 : index
    %8 = vector.load %arg5[%c0_8, %c0_9] : memref<1x128xf32, #tpu.memory_space<vmem>>, vector<1x128xf32>
    %9 = vector.broadcast %8 : vector<1x128xf32> to vector<160x128xf32>
    %10 = arith.addf %7, %9 : vector<160x128xf32>
    %cst_10 = arith.constant 0.000000e+00 : f32
    %11 = vector.broadcast %cst_10 : f32 to vector<160x128xf32>
    %12 = arith.maximumf %10, %11 : vector<160x128xf32>
    %13 = vector.shape_cast %12 : vector<160x128xf32> to vector<10x16x128xf32>
    %c8_i32 = arith.constant 8 : i32
    %14 = arith.muli %arg1, %c8_i32 : i32
    %c1_i32 = arith.constant 1 : i32
    %15 = arith.subi %14, %c1_i32 : i32
    %16 = tpu.iota {dimensions = array<i32: 0>} : vector<10x1x1xi32>
    %17 = vector.broadcast %15 : i32 to vector<10x1x1xi32>
    %18 = arith.addi %17, %16 : vector<10x1x1xi32>
    %c0_i32 = arith.constant 0 : i32
    %19 = vector.broadcast %c0_i32 : i32 to vector<10x1x1xi32>
    %20 = arith.cmpi sge, %18, %19 : vector<10x1x1xi32>
    %c16_i32 = arith.constant 16 : i32
    %21 = vector.broadcast %c16_i32 : i32 to vector<10x1x1xi32>
    %22 = arith.cmpi slt, %18, %21 : vector<10x1x1xi32>
    %23 = arith.andi %20, %22 : vector<10x1x1xi1>
    %cst_11 = arith.constant 0.000000e+00 : f32
    %24 = vector.shape_cast %23 : vector<10x1x1xi1> to vector<10x1x1xi1>
    %25 = vector.broadcast %24 : vector<10x1x1xi1> to vector<10x16x128xi1>
    %26 = vector.broadcast %cst_11 : f32 to vector<10x16x128xf32>
    %27 = arith.select %25, %13, %26 : vector<10x16x128xi1>, vector<10x16x128xf32>
    %cst_12 = arith.constant 0.000000e+00 : f32
    %28 = vector.broadcast %cst_12 : f32 to vector<10x1x128xf32>
    %c0_13 = arith.constant 0 : index
    %c0_14 = arith.constant 0 : index
    %c0_15 = arith.constant 0 : index
    %29 = vector.load %arg13[%c0_13, %c0_14, %c0_15] : memref<10x18x128xf32, #tpu.memory_space<vmem>>, vector<10x1x128xf32>
    tpu.vector_store %arg13[%c0_13, %c0_14, %c0_15], %28 {strides = array<i32>} : memref<10x18x128xf32, #tpu.memory_space<vmem>>, vector<10x1x128xf32>,
    %c0_16 = arith.constant 0 : index
    %c17 = arith.constant 17 : index
    %c0_17 = arith.constant 0 : index
    %30 = vector.load %arg13[%c0_16, %c17, %c0_17] : memref<10x18x128xf32, #tpu.memory_space<vmem>>, vector<10x1x128xf32>
    tpu.vector_store %arg13[%c0_16, %c17, %c0_17], %28 {strides = array<i32>} : memref<10x18x128xf32, #tpu.memory_space<vmem>>, vector<10x1x128xf32>,
    %c0_18 = arith.constant 0 : index
    %c1 = arith.constant 1 : index
    %c0_19 = arith.constant 0 : index
    %31 = vector.load %arg13[%c0_18, %c1, %c0_19] : memref<10x18x128xf32, #tpu.memory_space<vmem>>, vector<10x16x128xf32>
    tpu.vector_store %arg13[%c0_18, %c1, %c0_19], %27 {strides = array<i32>} : memref<10x18x128xf32, #tpu.memory_space<vmem>>, vector<10x16x128xf32>,
    %c0_20 = arith.constant 0 : index
    %c0_21 = arith.constant 0 : index
    %c0_22 = arith.constant 0 : index
    %32 = vector.load %arg13[%c0_20, %c0_21, %c0_22] : memref<10x18x128xf32, #tpu.memory_space<vmem>>, vector<8x16x128xf32>
    %33 = vector.shape_cast %32 : vector<8x16x128xf32> to vector<128x128xf32>
    %34 = arith.truncf %33 : vector<128x128xf32> to vector<128x128xbf16>
    %c0_23 = arith.constant 0 : index
    %c0_24 = arith.constant 0 : index
    %35 = vector.load %arg14[%c0_23, %c0_24] : memref<128x1152xbf16, #tpu.memory_space<vmem>>, vector<128x128xbf16>
    tpu.vector_store %arg14[%c0_23, %c0_24], %34 {strides = array<i32>} : memref<128x1152xbf16, #tpu.memory_space<vmem>>, vector<128x128xbf16>,
    %c0_25 = arith.constant 0 : index
    %c1_26 = arith.constant 1 : index
    %c0_27 = arith.constant 0 : index
    %36 = vector.load %arg13[%c0_25, %c1_26, %c0_27] : memref<10x18x128xf32, #tpu.memory_space<vmem>>, vector<8x16x128xf32>
    %37 = vector.shape_cast %36 : vector<8x16x128xf32> to vector<128x128xf32>
    %38 = arith.truncf %37 : vector<128x128xf32> to vector<128x128xbf16>
    %c0_28 = arith.constant 0 : index
    %c128 = arith.constant 128 : index
    %39 = vector.load %arg14[%c0_28, %c128] : memref<128x1152xbf16, #tpu.memory_space<vmem>>, vector<128x128xbf16>
    tpu.vector_store %arg14[%c0_28, %c128], %38 {strides = array<i32>} : memref<128x1152xbf16, #tpu.memory_space<vmem>>, vector<128x128xbf16>,
    %c0_29 = arith.constant 0 : index
    %c2 = arith.constant 2 : index
    %c0_30 = arith.constant 0 : index
    %40 = vector.load %arg13[%c0_29, %c2, %c0_30] : memref<10x18x128xf32, #tpu.memory_space<vmem>>, vector<8x16x128xf32>
    %41 = vector.shape_cast %40 : vector<8x16x128xf32> to vector<128x128xf32>
    %42 = arith.truncf %41 : vector<128x128xf32> to vector<128x128xbf16>
    %c0_31 = arith.constant 0 : index
    %c256 = arith.constant 256 : index
    %43 = vector.load %arg14[%c0_31, %c256] : memref<128x1152xbf16, #tpu.memory_space<vmem>>, vector<128x128xbf16>
    tpu.vector_store %arg14[%c0_31, %c256], %42 {strides = array<i32>} : memref<128x1152xbf16, #tpu.memory_space<vmem>>, vector<128x128xbf16>,
    %c1_32 = arith.constant 1 : index
    %c0_33 = arith.constant 0 : index
    %c0_34 = arith.constant 0 : index
    %44 = vector.load %arg13[%c1_32, %c0_33, %c0_34] : memref<10x18x128xf32, #tpu.memory_space<vmem>>, vector<8x16x128xf32>
    %45 = vector.shape_cast %44 : vector<8x16x128xf32> to vector<128x128xf32>
    %46 = arith.truncf %45 : vector<128x128xf32> to vector<128x128xbf16>
    %c0_35 = arith.constant 0 : index
    %c384 = arith.constant 384 : index
    %47 = vector.load %arg14[%c0_35, %c384] : memref<128x1152xbf16, #tpu.memory_space<vmem>>, vector<128x128xbf16>
    tpu.vector_store %arg14[%c0_35, %c384], %46 {strides = array<i32>} : memref<128x1152xbf16, #tpu.memory_space<vmem>>, vector<128x128xbf16>,
    %c1_36 = arith.constant 1 : index
    %c1_37 = arith.constant 1 : index
    %c0_38 = arith.constant 0 : index
    %48 = vector.load %arg13[%c1_36, %c1_37, %c0_38] : memref<10x18x128xf32, #tpu.memory_space<vmem>>, vector<8x16x128xf32>
    %49 = vector.shape_cast %48 : vector<8x16x128xf32> to vector<128x128xf32>
    %50 = arith.truncf %49 : vector<128x128xf32> to vector<128x128xbf16>
    %c0_39 = arith.constant 0 : index
    %c512 = arith.constant 512 : index
    %51 = vector.load %arg14[%c0_39, %c512] : memref<128x1152xbf16, #tpu.memory_space<vmem>>, vector<128x128xbf16>
    tpu.vector_store %arg14[%c0_39, %c512], %50 {strides = array<i32>} : memref<128x1152xbf16, #tpu.memory_space<vmem>>, vector<128x128xbf16>,
    %c1_40 = arith.constant 1 : index
    %c2_41 = arith.constant 2 : index
    %c0_42 = arith.constant 0 : index
    %52 = vector.load %arg13[%c1_40, %c2_41, %c0_42] : memref<10x18x128xf32, #tpu.memory_space<vmem>>, vector<8x16x128xf32>
    %53 = vector.shape_cast %52 : vector<8x16x128xf32> to vector<128x128xf32>
    %54 = arith.truncf %53 : vector<128x128xf32> to vector<128x128xbf16>
    %c0_43 = arith.constant 0 : index
    %c640 = arith.constant 640 : index
    %55 = vector.load %arg14[%c0_43, %c640] : memref<128x1152xbf16, #tpu.memory_space<vmem>>, vector<128x128xbf16>
    tpu.vector_store %arg14[%c0_43, %c640], %54 {strides = array<i32>} : memref<128x1152xbf16, #tpu.memory_space<vmem>>, vector<128x128xbf16>,
    %c2_44 = arith.constant 2 : index
    %c0_45 = arith.constant 0 : index
    %c0_46 = arith.constant 0 : index
    %56 = vector.load %arg13[%c2_44, %c0_45, %c0_46] : memref<10x18x128xf32, #tpu.memory_space<vmem>>, vector<8x16x128xf32>
    %57 = vector.shape_cast %56 : vector<8x16x128xf32> to vector<128x128xf32>
    %58 = arith.truncf %57 : vector<128x128xf32> to vector<128x128xbf16>
    %c0_47 = arith.constant 0 : index
    %c768 = arith.constant 768 : index
    %59 = vector.load %arg14[%c0_47, %c768] : memref<128x1152xbf16, #tpu.memory_space<vmem>>, vector<128x128xbf16>
    tpu.vector_store %arg14[%c0_47, %c768], %58 {strides = array<i32>} : memref<128x1152xbf16, #tpu.memory_space<vmem>>, vector<128x128xbf16>,
    %c2_48 = arith.constant 2 : index
    %c1_49 = arith.constant 1 : index
    %c0_50 = arith.constant 0 : index
    %60 = vector.load %arg13[%c2_48, %c1_49, %c0_50] : memref<10x18x128xf32, #tpu.memory_space<vmem>>, vector<8x16x128xf32>
    %61 = vector.shape_cast %60 : vector<8x16x128xf32> to vector<128x128xf32>
    %62 = arith.truncf %61 : vector<128x128xf32> to vector<128x128xbf16>
    %c0_51 = arith.constant 0 : index
    %c896 = arith.constant 896 : index
    %63 = vector.load %arg14[%c0_51, %c896] : memref<128x1152xbf16, #tpu.memory_space<vmem>>, vector<128x128xbf16>
    tpu.vector_store %arg14[%c0_51, %c896], %62 {strides = array<i32>} : memref<128x1152xbf16, #tpu.memory_space<vmem>>, vector<128x128xbf16>,
    %c2_52 = arith.constant 2 : index
    %c2_53 = arith.constant 2 : index
    %c0_54 = arith.constant 0 : index
    %64 = vector.load %arg13[%c2_52, %c2_53, %c0_54] : memref<10x18x128xf32, #tpu.memory_space<vmem>>, vector<8x16x128xf32>
    %65 = vector.shape_cast %64 : vector<8x16x128xf32> to vector<128x128xf32>
    %66 = arith.truncf %65 : vector<128x128xf32> to vector<128x128xbf16>
    %c0_55 = arith.constant 0 : index
    %c1024 = arith.constant 1024 : index
    %67 = vector.load %arg14[%c0_55, %c1024] : memref<128x1152xbf16, #tpu.memory_space<vmem>>, vector<128x128xbf16>
    tpu.vector_store %arg14[%c0_55, %c1024], %66 {strides = array<i32>} : memref<128x1152xbf16, #tpu.memory_space<vmem>>, vector<128x128xbf16>,
    %c0_56 = arith.constant 0 : index
    %c0_57 = arith.constant 0 : index
    %68 = vector.load %arg14[%c0_56, %c0_57] : memref<128x1152xbf16, #tpu.memory_space<vmem>>, vector<128x1152xbf16>
    %c0_58 = arith.constant 0 : index
    %c0_59 = arith.constant 0 : index
    %69 = vector.load %arg6[%c0_58, %c0_59] : memref<1152x128xbf16, #tpu.memory_space<vmem>>, vector<1152x128xbf16>
    %cst_60 = arith.constant dense<0.000000e+00> : vector<128x128xf32>
    %70 = tpu.matmul %68, %69, %cst_60 {dimension_numbers = #tpu.dot_dimension_numbers<[1], [0], [0], [1], [0, 0, 1, 1], [], []>} : vector<128x1152xbf16>, vector<1152x128xbf16>, vector<128x128xf32> -> vector<128x128xf32>
    %c0_61 = arith.constant 0 : index
    %c0_62 = arith.constant 0 : index
    %71 = vector.load %arg7[%c0_61, %c0_62] : memref<1x128xf32, #tpu.memory_space<vmem>>, vector<1x128xf32>
    %72 = vector.broadcast %71 : vector<1x128xf32> to vector<128x128xf32>
    %73 = arith.mulf %70, %72 : vector<128x128xf32>
    %c0_63 = arith.constant 0 : index
    %c0_64 = arith.constant 0 : index
    %74 = vector.load %arg8[%c0_63, %c0_64] : memref<1x128xf32, #tpu.memory_space<vmem>>, vector<1x128xf32>
    %75 = vector.broadcast %74 : vector<1x128xf32> to vector<128x128xf32>
    %76 = arith.addf %73, %75 : vector<128x128xf32>
    %cst_65 = arith.constant 0.000000e+00 : f32
    %77 = vector.broadcast %cst_65 : f32 to vector<128x128xf32>
    %78 = arith.maximumf %76, %77 : vector<128x128xf32>
    %79 = arith.truncf %78 : vector<128x128xf32> to vector<128x128xbf16>
    %c0_66 = arith.constant 0 : index
    %c0_67 = arith.constant 0 : index
    %80 = vector.load %arg9[%c0_66, %c0_67] : memref<128x128xbf16, #tpu.memory_space<vmem>>, vector<128x128xbf16>
    %cst_68 = arith.constant dense<0.000000e+00> : vector<128x128xf32>
    %81 = tpu.matmul %79, %80, %cst_68 {dimension_numbers = #tpu.dot_dimension_numbers<[1], [0], [0], [1], [0, 0, 1, 1], [], []>} : vector<128x128xbf16>, vector<128x128xbf16>, vector<128x128xf32> -> vector<128x128xf32>
    %82 = vector.extract_strided_slice %1 {offsets = [1, 0, 0], sizes = [8, 16, 128], strides = [1, 1, 1]} : vector<10x16x128xbf16> to vector<8x16x128xbf16>
    %83 = vector.shape_cast %82 : vector<8x16x128xbf16> to vector<128x128xbf16>
    %84 = arith.extf %83 : vector<128x128xbf16> to vector<128x128xf32>
    %c0_69 = arith.constant 0 : index
    %c0_70 = arith.constant 0 : index
    %85 = vector.load %arg10[%c0_69, %c0_70] : memref<1x128xf32, #tpu.memory_space<vmem>>, vector<1x128xf32>
    %86 = vector.broadcast %85 : vector<1x128xf32> to vector<128x128xf32>
    %87 = arith.mulf %81, %86 : vector<128x128xf32>
    %c0_71 = arith.constant 0 : index
    %c0_72 = arith.constant 0 : index
    %88 = vector.load %arg11[%c0_71, %c0_72] : memref<1x128xf32, #tpu.memory_space<vmem>>, vector<1x128xf32>
    %89 = vector.broadcast %88 : vector<1x128xf32> to vector<128x128xf32>
    %90 = arith.addf %87, %89 : vector<128x128xf32>
    %91 = arith.addf %90, %84 : vector<128x128xf32>
    %cst_73 = arith.constant 0.000000e+00 : f32
    %92 = vector.broadcast %cst_73 : f32 to vector<128x128xf32>
    %93 = arith.maximumf %91, %92 : vector<128x128xf32>
    %94 = vector.shape_cast %93 : vector<128x128xf32> to vector<8x16x128xf32>
    %c0_74 = arith.constant 0 : index
    %c0_75 = arith.constant 0 : index
    %c0_76 = arith.constant 0 : index
    %c0_77 = arith.constant 0 : index
    %95 = vector.load %arg12[%c0_74, %c0_75, %c0_76, %c0_77] : memref<1x8x16x128xf32, #tpu.memory_space<vmem>>, vector<1x8x16x128xf32>
    %96 = vector.shape_cast %95 : vector<1x8x16x128xf32> to vector<8x16x128xf32>
    %97 = vector.shape_cast %94 : vector<8x16x128xf32> to vector<1x8x16x128xf32>
    tpu.vector_store %arg12[%c0_74, %c0_75, %c0_76, %c0_77], %97 {strides = array<i32>} : memref<1x8x16x128xf32, #tpu.memory_space<vmem>>, vector<1x8x16x128xf32>,
    return
  }
  func.func @transform_0(%arg0: i32, %arg1: i32) -> (i32, i32, i32, i32, i32) {
    %c0_i32 = arith.constant 0 : i32
    %c0_i32_0 = arith.constant 0 : i32
    %c0_i32_1 = arith.constant 0 : i32
    %c0_i32_2 = arith.constant 0 : i32
    return %arg0, %arg1, %c0_i32, %c0_i32_0, %c0_i32_1 : i32, i32, i32, i32, i32
  }
  func.func @transform_1(%arg0: i32, %arg1: i32) -> (i32, i32) {
    %c0_i32 = arith.constant 0 : i32
    %c0_i32_0 = arith.constant 0 : i32
    %c0_i32_1 = arith.constant 0 : i32
    return %c0_i32, %c0_i32_0 : i32, i32
  }
  func.func @transform_2(%arg0: i32, %arg1: i32) -> (i32, i32) {
    %c0_i32 = arith.constant 0 : i32
    %c0_i32_0 = arith.constant 0 : i32
    %c0_i32_1 = arith.constant 0 : i32
    return %c0_i32, %c0_i32_0 : i32, i32
  }
  func.func @transform_3(%arg0: i32, %arg1: i32) -> (i32, i32) {
    %c0_i32 = arith.constant 0 : i32
    %c0_i32_0 = arith.constant 0 : i32
    %c0_i32_1 = arith.constant 0 : i32
    return %c0_i32, %c0_i32_0 : i32, i32
  }
  func.func @transform_4(%arg0: i32, %arg1: i32) -> (i32, i32) {
    %c0_i32 = arith.constant 0 : i32
    %c0_i32_0 = arith.constant 0 : i32
    %c0_i32_1 = arith.constant 0 : i32
    return %c0_i32, %c0_i32_0 : i32, i32
  }
  func.func @transform_5(%arg0: i32, %arg1: i32) -> (i32, i32) {
    %c0_i32 = arith.constant 0 : i32
    %c0_i32_0 = arith.constant 0 : i32
    %c0_i32_1 = arith.constant 0 : i32
    return %c0_i32, %c0_i32_0 : i32, i32
  }
  func.func @transform_6(%arg0: i32, %arg1: i32) -> (i32, i32) {
    %c0_i32 = arith.constant 0 : i32
    %c0_i32_0 = arith.constant 0 : i32
    %c0_i32_1 = arith.constant 0 : i32
    return %c0_i32, %c0_i32_0 : i32, i32
  }
  func.func @transform_7(%arg0: i32, %arg1: i32) -> (i32, i32) {
    %c0_i32 = arith.constant 0 : i32
    %c0_i32_0 = arith.constant 0 : i32
    %c0_i32_1 = arith.constant 0 : i32
    return %c0_i32, %c0_i32_0 : i32, i32
  }
  func.func @transform_8(%arg0: i32, %arg1: i32) -> (i32, i32) {
    %c0_i32 = arith.constant 0 : i32
    %c0_i32_0 = arith.constant 0 : i32
    %c0_i32_1 = arith.constant 0 : i32
    return %c0_i32, %c0_i32_0 : i32, i32
  }
  func.func @transform_9(%arg0: i32, %arg1: i32) -> (i32, i32) {
    %c0_i32 = arith.constant 0 : i32
    %c0_i32_0 = arith.constant 0 : i32
    %c0_i32_1 = arith.constant 0 : i32
    return %c0_i32, %c0_i32_0 : i32, i32
  }
  func.func @transform_10(%arg0: i32, %arg1: i32) -> (i32, i32, i32, i32) {
    %c0_i32 = arith.constant 0 : i32
    %c0_i32_0 = arith.constant 0 : i32
    %c0_i32_1 = arith.constant 0 : i32
    return %arg0, %arg1, %c0_i32, %c0_i32_0 : i32, i32, i32, i32
  }
}

</mosaic_0001>

<bundles_post_ra>
// kernel: tpu_custom_call.1
= control target key start
LH: loop header
LB: loop body
LE: loop exit
PB: predicated region body
PF: predicated region fallthrough
CT: control target
= control target key end

     0   :  { %s6013_s0 = inlined_call_operand.hbm [shape: bf16[2,2,10,16,128], index: 0, kind: input, shape index: {}]   ;;  %s6014_s1 = inlined_call_operand.hbm [shape: bf16[128,128], index: 1, kind: input, shape index: {}]   ;;  %s6015_s2 = inlined_call_operand.vmem [shape: f32[1,128], index: 2, kind: input, shape index: {}]   ;;  %s6016_s3 = inlined_call_operand.vmem [shape: f32[1,128], index: 3, kind: input, shape index: {}]   ;;  %s6017_s4 = inlined_call_operand.hbm [shape: bf16[1152,128], index: 4, kind: input, shape index: {}]   ;;  %s6018_s5 = inlined_call_operand.vmem [shape: f32[1,128], index: 5, kind: input, shape index: {}]   ;;  %s6019_s6 = inlined_call_operand.vmem [shape: f32[1,128], index: 6, kind: input, shape index: {}]   ;;  %s6020_s7 = inlined_call_operand.hbm [shape: bf16[128,128], index: 7, kind: input, shape index: {}]   ;;  %s6021_s8 = inlined_call_operand.vmem [shape: f32[1,128], index: 8, kind: input, shape index: {}]   ;;  %s6022_s9 = inlined_call_operand.vmem [shape: f32[1,128], index: 9, kind: input, shape index: {}]   ;;  %s6023_s10 = inlined_call_operand.hbm [shape: f32[2,16,16,128], index: 10, kind: output, shape index: {}]  }
   0x1   :  { %6036 = sst [smem:[#allocation45_spill]] %s6014_s1 }
   0x2   :  { %6037 = sst [smem:[#allocation46_spill]] %s6017_s4 }
   0x3   :  { %6038 = sst [smem:[#allocation47_spill]] %s6020_s7 }
   0x4   :  { %6039 = sst [smem:[#allocation48_spill]] %s6022_s9 }
   0x5   :  { %6040 = sst [smem:[#allocation49_spill]] %s6023_s10 }
   0x6   :  { %15 = vsyncpa [#allocation5], 0 }
   0x7   :  { %17 = vsyncpa [#allocation5 + $0x1], 0 }
   0x8   :  { %18 = vsyncpa [#allocation8], 0 }
   0x9   :  { %19 = vsyncpa [#allocation11], 0 }
   0xa   :  { %20 = vsyncpa [#allocation6], 0 }
   0xb   :  { %22 = vsyncpa [#allocation6 + $0x1], 0  ;;  %s5269_s13 = smov 0   ;;  %s5271_s14 = smov 0  }
   0xc   :  { %s5273_s15 = smov 0   ;;  %s5275_s16 = smov 0  }
   0xd   :  { %s5277_s17 = smov 0   ;;  %s5279_s18 = smov 0  }
   0xe   :  { %s5281_s19 = smov 0   ;;  %s5283_s20 = smov 0  }
   0xf LB: > { %6041 = sst [smem:[#allocation17_spill]] %s5174_s13  ;;  %s3747_s21 = sadd.s32 4294967295, %s5202_s20   ;;  %s5202_s20 = sphi %s5283_s20, %s28_s20   ;;  %s5198_s19 = sphi %s5281_s19, %s6132_s19   ;;  %s5194_s18 = sphi %s5279_s18, %s6137_s18   ;;  %s5190_s17 = sphi %s5277_s17, %s6130_s17   ;;  %s5186_s16 = sphi %s5275_s16, %s6136_s16   ;;  %s5182_s15 = sphi %s5273_s15, %s6135_s15   ;;  %s5178_s14 = sphi %s5271_s14, %s6134_s14   ;;  %s5174_s13 = sphi %s5269_s13, %s6133_s13  }
  0x10   : > { %6042 = sst [smem:[#allocation18_spill]] %s5190_s17  ;;  %s3748_s22 = sadd.s32 4294967294, %s5202_s20  }
  0x11   : > { %6043 = sst [smem:[#allocation19_spill]] %s5198_s19  ;;  %p62_p0 = scmp.ne.s32.totalorder %s5178_s14, %s5174_s13 }
  0x12   : > { %6044 = sst [smem:[#allocation20_spill]] %s5202_s20  ;;  %p5313_p1 = scmp.eq.s32.totalorder %s3747_s21, 0 }
  0x13   : > { %p5317_p2 = scmp.eq.s32.totalorder %s3747_s21, 3  ;;  %p283_p3 = scmp.eq.s32.totalorder %s3748_s22, 3 }
  0x14   : > { %p5323_p4 = por %p5313_p1, %p62_p0  ;;  %p3749_p5 = scmp.ge.s32.totalorder %s5202_s20, 1 }
  0x15   : > { %p5328_p6 = por %p283_p3, %p62_p0  ;;  %p290_p7 = scmp.lt.s32.totalorder %s5202_s20, 5 }
  0x16   : > { %s5204_s28 = smov [#allocation7]   ;;  %s5205_s11 = smov [#allocation9]  }
  0x17   : > { %s6048_s26 = scalar_select %p5328_p6, 1, 0 }
  0x18   : > { %p5333_p8 = pnand %p3749_p5, %p290_p7  ;;  %s302_s29 = sshll.u32 %s5204_s28, 4  ;;  %s303_s29 = int_to_ptr.vmem [resolvable:$true] %s302_s29 }
  0x19   : > { %6049 = sst [smem:[#allocation21_spill]] %s6048_s26  ;;  %s321_s12 = sshll.u32 %s5205_s11, 4  ;;  %s322_s12 = int_to_ptr.vmem [resolvable:$true] %s321_s12 }
  0x1a   : > { %p4676_p9 = pneg %p5333_p8  ;;  %s5206_s21 = smov [#allocation10]  }
  0x1b   : > { %s340_s22 = sshll.u32 %s5206_s21, 4  ;;  %s5003_s26 = scalar_lea.vmem %s303_s29, 1024  ;;  %s341_s22 = int_to_ptr.vmem [resolvable:$true] %s340_s22 }
  0x1c   : > { %p5341_p10 = pnand %p4676_p9, %p5313_p1  ;;  %p5004_p12 = scmp.ne.s32.totalorder %s303_s29, %s5003_s26 }
  0x1d   : > { %p5011_p3 = scmp.lt.s32.totalorder %s303_s29, %s303_s29  ;;  %p5012_p5 = scmp.lt.s32.totalorder %s5003_s26, %s5003_s26 }
  0x1e   : > { %p4994_p11 = pneg %p5341_p10 }
  0x1f   : > { %p5013_p7 = por %p5012_p5, %p5011_p3 }
  0x20   : > { %p5006_p13 = pnand %p5004_p12, %p4994_p11 }
  0x22   : > { %p5007_p0 = pneg %p5006_p13 }
  0x24   : > { %p5014_p9 = pnand %p5013_p7, %p5007_p0 }
  0x26   : > { %5017 = shalt.err (!%p5014_p9)
}
  0x27   : > { %s6027_s28 = smov 64   ;;  %s6028_s11 = smov 4  }
  0x28   : > { %s6052_s1 = sld [smem:[#allocation45_spill]]  ;;  %s5029_s10 = scalar_lea.vmem %s322_s12, 9216 }
  0x29   : > { %p5030_p12 = scmp.ne.s32.totalorder %s322_s12, %s5029_s10  ;;  %p5037_p0 = scmp.lt.s32.totalorder %s322_s12, %s322_s12 }
  0x2a   : > { %p5038_p5 = scmp.lt.s32.totalorder %s5029_s10, %s5029_s10 }
  0x2b   : > { %p5032_p13 = pnand %p5030_p12, %p4994_p11 }
  0x2c   : > { %p5039_p7 = por %p5038_p5, %p5037_p0 }
  0x2d   : > { %p5033_p3 = pneg %p5032_p13 }
  0x2e   : > { %4679 = dma.hbm_to_vmem [thread:$0]  (!%p5341_p10), %s6052_s1, 1024, %s303_s29, [#allocation8], %s6027_s28, %s6027_s28, %s6028_s11  }
  0x2f   : > { %p5040_p9 = pnand %p5039_p7, %p5033_p3 }
  0x31   : > { %5043 = shalt.err (!%p5040_p9)
}
  0x32   : > { %s6053_s4 = sld [smem:[#allocation46_spill]]  ;;  %s5055_s13 = scalar_lea.vmem %s341_s22, 1024 }
  0x33   : > { %p5056_p6 = scmp.ne.s32.totalorder %s341_s22, %s5055_s13  ;;  %p5063_p0 = scmp.lt.s32.totalorder %s341_s22, %s341_s22 }
  0x34   : > { %p5064_p3 = scmp.lt.s32.totalorder %s5055_s13, %s5055_s13 }
  0x35   : > { %p5058_p12 = pnand %p5056_p6, %p4994_p11 }
  0x36   : > { %p5065_p5 = por %p5064_p3, %p5063_p0 }
  0x37   : > { %p5059_p13 = pneg %p5058_p12 }
  0x38   : > { %4682 = dma.hbm_to_vmem [thread:$0]  (!%p5341_p10), %s6053_s4, 9216, %s322_s12, [#allocation8], %s6027_s28, %s6027_s28, %s6028_s11  }
  0x39   : > { %p5066_p7 = pnand %p5065_p5, %p5059_p13 }
  0x3b   : > { %5069 = shalt.err (!%p5066_p7)
}
  0x3c   : > { %s6054_s7 = sld [smem:[#allocation47_spill]]  ;;  %s37_s29 = sadd.s32 1, %s5194_s18 }
  0x3d   : > { %p38_p6 = scmp.ge.s32.totalorder %s37_s29, 2  ;;  %s40_s30 = sadd.s32 1, %s5198_s19 }
  0x3e   : > { %s49_s12 = sadd.s32 1, %s5182_s15  ;;  %p56_p11 = scmp.ne.s32.totalorder %s5182_s15, %s5178_s14 }
  0x3f   : > { %s6139_s29 = smov (%p38_p6, %s37_s29), 0  ;;  %s6141_s30 = smov (!%p38_p6, %s40_s30), %s5198_s19 }
  0x40   : > { %6055 = sst [smem:[#allocation22_spill]] %s6139_s29  ;;  %s45_s21 = ssub.s32 %s5194_s18, %s6139_s29 }
  0x41   : > { %p57_p9 = scmp.eq.s32.totalorder %s5202_s20, 0  ;;  %p42_p12 = scmp.ge.s32.totalorder %s6141_s30, 2 }
  0x42   : > { %4685 = dma.hbm_to_vmem [thread:$0]  (!%p5341_p10), %s6054_s7, 1024, %s341_s22, [#allocation11], %s6027_s28, %s6027_s28, %s6028_s11  }
  0x43   : > { %p5393_p13 = por %p5317_p2, %p56_p11  ;;  %p58_p10 = por %p57_p9, %p56_p11 }
  0x44   : > { %p4697_p0 = scmp.lt.s32.totalorder %s5202_s20, 4  ;;  %s6143_s30 = smov (%p42_p12, %s6141_s30), 0 }
  0x45   : > { %s6056_s26 = scalar_select %p5393_p13, 1, 0 }
  0x46   : > { %6058 = sst [smem:[#allocation24_spill]] %s6143_s30  ;;  %s360_s22 = sand.u32 1, %s5182_s15  }
  0x47   : > { %6057 = sst [smem:[#allocation23_spill]] %s6056_s26  ;;  %s4657_s13 = smul.u32 20, %s5194_s18 }
  0x48   : > { %s44_s10 = ssub.s32 %s5198_s19, %s6143_s30  ;;  %s4656_s28 = smul.u32 80, %s360_s22 }
  0x49   : > { %s46_s17 = sor.u32 %s45_s21, %s44_s10  ;;  %s4658_s11 = smul.u32 40, %s5198_s19 }
  0x4a   : > { %p47_p3 = scmp.eq.s32.totalorder %s46_s17, 0  ;;  %p5405_p5 = pnand %p4697_p0, %p58_p10 }
  0x4b   : > { %s370_s4 = sadd.s32 %s4658_s11, %s4657_s13  ;;  %s364_s7 = scalar_lea.vmem [#allocation4], %s4656_s28 }
  0x4c   : > { %s5410_s24 = scalar_select %p47_p3, %s5182_s15, %s49_s12  }
  0x4d   : > { %s373_s29 = sshll.u32 %s364_s7, 4  ;;  %s3754_s20 = sshll.u32 %s370_s4, 6  ;;  %s374_s29 = int_to_ptr.vmem [resolvable:$true] %s373_s29 }
  0x4e   : > { %s372_s30 = scalar_lea.hbm %s6013_s0, %s3754_s20  ;;  %s361_s21 = scalar_lea.sflag [#allocation5], %s360_s22 }
  0x4f   : > { %p5072_p2 = pneg %p5405_p5  ;;  %s5083_s10 = scalar_lea.vmem %s374_s29, 1280 }
  0x50   : > { %p5084_p7 = scmp.ne.s32.totalorder %s374_s29, %s5083_s10  ;;  %s5209_s17 = smov [#allocation4]  }
  0x51   : > { %s5088_s19 = sshll.u32 %s5209_s17, 4  ;;  %s5089_s19 = int_to_ptr.vmem [resolvable:$false] %s5088_s19 }
  0x52   : > { %p5086_p6 = pnand %p5084_p7, %p5072_p2  ;;  %s5090_s12 = scalar_lea.vmem %s5089_s19, 2560 }
  0x53   : > { %p5091_p9 = scmp.lt.s32.totalorder %s374_s29, %s5089_s19  ;;  %p5092_p12 = scmp.lt.s32.totalorder %s5090_s12, %s5083_s10 }
  0x54   : > { %p5087_p11 = pneg %p5086_p6 }
  0x55   : > { %p5093_p10 = por %p5092_p12, %p5091_p9 }
  0x57   : > { %p5094_p0 = pnand %p5093_p10, %p5087_p11 }
  0x59   : > { %5097 = shalt.err (!%p5094_p0)
}
  0x5a   : > { %s6060_s4 = smov 4   ;;  %s6061_s7 = smov 64  }
  0x5b   : > { %4689 = dma.hbm_to_vmem [thread:$0]  (!%p5405_p5), %s372_s30, 1280, %s374_s29, %s361_s21, %s6061_s7, %s6061_s7, %s6060_s4  }
  0x5c   : > { %385 = sbr.rel (%p5333_p8) target bundleno = 962 (0x3c2), region = 60 }
  0x61   : > { %s5425_s9 = sand.u32 1, %s5178_s14  }
  0x62   : > { %s4659_s19 = smul.u32 80, %s5425_s9  ;;  %s388_s20 = scalar_lea.sflag [#allocation5], %s5425_s9 }
  0x64   : > { %s5429_s28 = scalar_lea.vmem [#allocation4], %s4659_s19 }
  0x65   : > { %5157 = dma.done.wait (%p5323_p4), %s388_s20, 1280  }
  0x66   : > { %5159 = vsyncadd (%p5323_p4), %s388_s20, 4294966016 }
  0x67   : > { %5161 = dma.done.wait (%p5313_p1), [#allocation8], 10240  }
  0x68   : > { %5163 = vsyncadd (%p5313_p1), [#allocation8], 4294957056 }
  0x69   : > { %5165 = dma.done.wait (%p5313_p1), [#allocation11], 1024  }
  0x6a   : > { %5167 = vsyncadd (%p5313_p1), [#allocation11], 4294966272  ;;  %v4774_v0 = vld [vmem:[#allocation7 + $0x38] sm:$0xff]   ;;  %v4775_v1 = vld [vmem:[#allocation7 + $0x30] sm:$0xff]   ;;  %v5210_v26 = vmov 0.0   ;;  %s3780_s1 = sshll.u32 %s5186_s16, 3 }
  0x6b   : > { %4540 = vmatprep.subr.bf16.mxu0 %v4774_v0  ;;  %v4776_v2 = vld [vmem:[#allocation7 + $0x28] sm:$0xff]   ;;  %v4777_v3 = vld [vmem:[#allocation7 + $0x20] sm:$0xff]   ;;  %v4778_v5 = vld [vmem:[#allocation7 + $0x18] sm:$0xff]   ;;  %856 = vst [vmem:[#allocation2 + $0x18] sm:$0x1] %v5210_v26  ;;  %s3781_s23 = sadd.s32 4294967295, %s3780_s1 }
  0x6c   : > { %4541 = vmatpush3.bf16.msra.mxu0 %v4774_v0  ;;  %v4782_v4 = vld [vmem:[%s5429_s28] sm:$0xff]   ;;  %v4780_v7 = vld [vmem:[#allocation7 + $0x8] sm:$0xff]   ;;  %v446_v10 = vld [vmem:[%s5429_s28 + $0x10] sm:$0xff]   ;;  %855 = vst [vmem:[#allocation2] sm:$0x1] %v5210_v26  ;;  %v5454_v53 = vstv %s3781_s23  ;;  %s6122_s4 = sld [smem:[#allocation48_spill]] }
  0x6d   : > { %4542 = vmatprep.subr.bf16.mxu0 %v4775_v1  ;;  %4556 = vmatprep.mubr.bf16.mxu0 %v4782_v4  ;;  %v4779_v6 = vld [vmem:[#allocation7 + $0x10] sm:$0xff]   ;;  %v4781_v8 = vld [vmem:[#allocation7] sm:$0xff]   ;;  %v444_v9 = vld [vmem:[%s5429_s28 + $0x8] sm:$0xff]   ;;  %857 = vst [vmem:[#allocation2 + $0x30] sm:$0x1] %v5210_v26  ;;  %v776_v54 = vadd.s32 1, %v5454_v53 }
  0x6e   : > { %v448_v11 = vld [vmem:[%s5429_s28 + $0x18] sm:$0xff]   ;;  %v450_v12 = vld [vmem:[%s5429_s28 + $0x20] sm:$0xff]   ;;  %v452_v13 = vld [vmem:[%s5429_s28 + $0x28] sm:$0xff]   ;;  %858 = vst [vmem:[#allocation2 + $0x48] sm:$0x1] %v5210_v26  ;;  %vm785_vm2 = vcmp.ge.s32.totalorder %v5454_v53, 0 }
  0x6f   : > { %v454_v14 = vld [vmem:[%s5429_s28 + $0x30] sm:$0xff]   ;;  %v456_v15 = vld [vmem:[%s5429_s28 + $0x38] sm:$0xff]   ;;  %v458_v16 = vld [vmem:[%s5429_s28 + $0x40] sm:$0xff]   ;;  %859 = vst [vmem:[#allocation2 + $0x60] sm:$0x1] %v5210_v26  ;;  %vm786_vm0 = vcmp.ge.s32.totalorder %v776_v54, 0 }
  0x70   : > { %4543 = vmatpush3.bf16.msra.mxu0 %v4775_v1  ;;  %v4791_v17 = vld [vmem:[%s5429_s28 + $0x48] sm:$0xff]   ;;  %v4796_v22 = vld [vmem:[#allocation9 + $0x70] sm:$0xff]   ;;  %860 = vst [vmem:[#allocation2 + $0x78] sm:$0x1] %v5210_v26  ;;  %861 = vst [vmem:[#allocation2 + $0x90] sm:$0x1] %v5210_v26 }
  0x71   : > { %4544 = vmatprep.subr.bf16.mxu0 %v4776_v2  ;;  %v4792_v18 = vld [vmem:[#allocation9 + $0x78] sm:$0xff]   ;;  %v4798_v23 = vld [vmem:[#allocation9 + $0xf0] sm:$0xff]   ;;  %862 = vst [vmem:[#allocation2 + $0xa8] sm:$0x1] %v5210_v26  ;;  %863 = vst [vmem:[#allocation2 + $0xc0] sm:$0x1] %v5210_v26 }
  0x72   : > { %v4794_v19 = vld [vmem:[#allocation9 + $0xf8] sm:$0xff]   ;;  %4252 = vmatprep.subr.bf16.mxu1 %v4792_v18  ;;  %v4797_v24 = vld [vmem:[#allocation9 + $0x30] sm:$0xff]   ;;  %864 = vst [vmem:[#allocation2 + $0xd8] sm:$0x1] %v5210_v26  ;;  %865 = vst [vmem:[#allocation2 + $0x11] sm:$0x1] %v5210_v26 }
  0x73   : > { %v4793_v20 = vld [vmem:[#allocation9 + $0x38] sm:$0xff]   ;;  %v4799_v25 = vld [vmem:[#allocation9 + $0xb0] sm:$0xff]   ;;  %866 = vst [vmem:[#allocation2 + $0x29] sm:$0x1] %v5210_v26  ;;  %867 = vst [vmem:[#allocation2 + $0x41] sm:$0x1] %v5210_v26 }
  0x74   : > { %4545 = vmatpush3.bf16.msra.mxu0 %v4776_v2  ;;  %v4795_v21 = vld [vmem:[#allocation9 + $0xb8] sm:$0xff]   ;;  %4253 = vmatpush3.bf16.msra.mxu1 %v4793_v20  ;;  %868 = vst [vmem:[#allocation2 + $0x59] sm:$0x1] %v5210_v26  ;;  %869 = vst [vmem:[#allocation2 + $0x71] sm:$0x1] %v5210_v26  ;;  %v4800_v27 = vld [vmem:[#allocation9 + $0x68] sm:$0xff]  }
  0x75   : > { %4546 = vmatprep.subr.bf16.mxu0 %v4777_v3  ;;  %4254 = vmatprep.subr.bf16.mxu1 %v4796_v22  ;;  %870 = vst [vmem:[#allocation2 + $0x89] sm:$0x1] %v5210_v26  ;;  %871 = vst [vmem:[#allocation2 + $0xa1] sm:$0x1] %v5210_v26  ;;  %v4802_v28 = vld [vmem:[#allocation9 + $0xe8] sm:$0xff]   ;;  %v4804_v31 = vld [vmem:[#allocation9 + $0x60] sm:$0xff]  }
  0x76   : > { %872 = vst [vmem:[#allocation2 + $0xb9] sm:$0x1] %v5210_v26  ;;  %873 = vst [vmem:[#allocation2 + $0xd1] sm:$0x1] %v5210_v26  ;;  %v4801_v29 = vld [vmem:[#allocation9 + $0x28] sm:$0xff]   ;;  %v4806_v32 = vld [vmem:[#allocation9 + $0xe0] sm:$0xff]  }
  0x77   : > { %874 = vst [vmem:[#allocation2 + $0xe9] sm:$0x1] %v5210_v26  ;;  %v4803_v30 = vld [vmem:[#allocation9 + $0xa8] sm:$0xff]   ;;  %v4805_v33 = vld [vmem:[#allocation9 + $0x20] sm:$0xff]   ;;  %v4808_v35 = vld [vmem:[#allocation9 + $0x58] sm:$0xff]   ;;  %vm796_vm1 = vcmp.lt.s32.totalorder %v776_v54, 16 }
  0x78   : > { %4547 = vmatpush3.bf16.msra.mxu0 %v4777_v3  ;;  %4255 = vmatpush3.bf16.msra.mxu1 %v4797_v24  ;;  %v4807_v34 = vld [vmem:[#allocation9 + $0xa0] sm:$0xff]   ;;  %v4810_v36 = vld [vmem:[#allocation9 + $0xd8] sm:$0xff]   ;;  %v4812_v39 = vld [vmem:[#allocation9 + $0x50] sm:$0xff]   ;;  %vm795_vm3 = vcmp.lt.s32.totalorder %v5454_v53, 16  ;;  %v778_v0 = vadd.s32 3, %v5454_v53  ;;  %v5499_v20 = vadd.s32 6, %v5454_v53 }
  0x79   : > { %4548 = vmatprep.subr.bf16.mxu0 %v4778_v5  ;;  %4256 = vmatprep.subr.bf16.mxu1 %v4800_v27  ;;  %v4809_v37 = vld [vmem:[#allocation9 + $0x18] sm:$0xff]   ;;  %v4814_v40 = vld [vmem:[#allocation9 + $0xd0] sm:$0xff]   ;;  %v4816_v43 = vld [vmem:[#allocation9 + $0x48] sm:$0xff]   ;;  %s3759_s7 = sshll.u32 %s5425_s9, 7  ;;  %s6123_s20 = sld [smem:[#allocation18_spill]] }
  0x7a   : > { %v4811_v38 = vld [vmem:[#allocation9 + $0x98] sm:$0xff]   ;;  %v4813_v41 = vld [vmem:[#allocation9 + $0x10] sm:$0xff]   ;;  %v4818_v44 = vld [vmem:[#allocation9 + $0xc8] sm:$0xff]   ;;  %vm788_vm6 = vcmp.ge.s32.totalorder %v778_v0, 0  ;;  %vm798_vm7 = vcmp.lt.s32.totalorder %v778_v0, 16  ;;  %s5903_s19 = scalar_lea.vmem [#allocation12], %s3759_s7 }
  0x7b   : > { %v4815_v42 = vld [vmem:[#allocation9 + $0x90] sm:$0xff]   ;;  %v4817_v45 = vld [vmem:[#allocation9 + $0x8] sm:$0xff]   ;;  %v4820_v47 = vld [vmem:[#allocation9 + $0x40] sm:$0xff]   ;;  %s4233_s1 = sshll.u32 %s5186_s16, 4  ;;  %s3628_s25 = sshll.u32 %s5903_s19, 4  ;;  %s5953_s25 = int_to_ptr.vmem [resolvable:$true] %s3628_s25 }
  0x7c   : > { %4549 = vmatpush3.bf16.msra.mxu0 %v4778_v5  ;;  %4257 = vmatpush3.bf16.msra.mxu1 %v4801_v29  ;;  %v4819_v46 = vld [vmem:[#allocation9 + $0x88] sm:$0xff]   ;;  %v4822_v48 = vld [vmem:[#allocation9 + $0xc0] sm:$0xff]   ;;  %v4830_v51 = vld [vmem:[#allocation9 + $0x178] sm:$0xff]   ;;  %v5517_v29 = vadd.s32 9, %v5454_v53  ;;  %s6125_s30 = sld [smem:[#allocation49_spill]]  ;;  %s3612_s22 = scalar_lea.sflag [#allocation6], %s5425_s9 }
  0x7d   : > { %4550 = vmatprep.subr.bf16.mxu0 %v4779_v6  ;;  %4258 = vmatprep.subr.bf16.mxu1 %v4804_v31  ;;  %v4821_v49 = vld [vmem:[#allocation9] sm:$0xff]   ;;  %v4860_v52 = vld [vmem:[#allocation9 + $0x1f8] sm:$0xff]   ;;  %v5460_v55 = vld [vmem:[%s6015_s2] ss:$0 sm:$0xff]  ;;  %s5098_s13 = scalar_lea.vmem %s5953_s25, 2048  ;;  %s5211_s21 = smov [#allocation12]  }
  0x7e   : > { %v4823_v50 = vld [vmem:[#allocation9 + $0x80] sm:$0xff]   ;;  %v5465_v57 = vld [vmem:[%s6016_s3] ss:$0 sm:$0xff]  ;;  %vm5472_vm4 = vmand %vm786_vm0, %vm796_vm1  ;;  %vm791_vm0 = vcmp.ge.s32.totalorder %v5499_v20, 0  ;;  %vm801_vm1 = vcmp.lt.s32.totalorder %v5499_v20, 16  ;;  %p5099_p1 = scmp.ne.s32.totalorder %s5953_s25, %s5098_s13  ;;  %s5102_s10 = sshll.u32 %s5211_s21, 4  ;;  %s5103_s10 = int_to_ptr.vmem [resolvable:$false] %s5102_s10 }
  0x7f   : > { %vm5479_vm5 = vmand %vm785_vm2, %vm795_vm3  ;;  %s4085_s23 = sshll.u32 %s6123_s20, 5  ;;  %s5104_s17 = scalar_lea.vmem %s5103_s10, 4096 }
  0x80   : > { %4551 = vmatpush3.bf16.msra.mxu0 %v4779_v6  ;;  %4259 = vmatpush3.bf16.msra.mxu1 %v4805_v33  ;;  %v777_v6 = vadd.s32 2, %v5454_v53  ;;  %vm5508_vm11 = vmand %vm788_vm6, %vm798_vm7  ;;  %vm804_vm7 = vcmp.lt.s32.totalorder %v5517_v29, 16  ;;  %s3625_s16 = sadd.s32 %s4233_s1, %s4085_s23  ;;  %p5100_p4 = pnand %p5099_p1, %p5393_p13 }
  0x81   : > { %4552 = vmatprep.subr.bf16.mxu0 %v4780_v7  ;;  %4260 = vmatprep.subr.bf16.mxu1 %v4808_v35  ;;  %s4086_s27 = sshll.u32 %s3625_s16, 7  ;;  %p5105_p3 = scmp.lt.s32.totalorder %s5953_s25, %s5103_s10 }
  0x82   : > { %vm787_vm8 = vcmp.ge.s32.totalorder %v777_v6, 0  ;;  %vm797_vm9 = vcmp.lt.s32.totalorder %v777_v6, 16  ;;  %s5959_s26 = scalar_lea.hbm %s6125_s30, %s4086_s27  ;;  %p5101_p8 = pneg %p5100_p4 }
  0x83   : > { %vm5525_vm13 = vmand %vm787_vm8, %vm797_vm9  ;;  %p5106_p5 = scmp.lt.s32.totalorder %s5104_s17, %s5098_s13 }
  0x84   : > { %4553 = vmatpush3.bf16.msra.mxu0 %v4780_v7  ;;  %4261 = vmatpush3.bf16.msra.mxu1 %v4809_v37  ;;  %v5485_v7 = vadd.s32 4, %v5454_v53  ;;  %vm5584_vm8 = vmand %vm791_vm0, %vm801_vm1 }
  0x85   : > { %4554 = vmatprep.subr.bf16.mxu0 %v4781_v8  ;;  %4262 = vmatprep.subr.bf16.mxu1 %v4812_v39  ;;  %p5107_p2 = por %p5106_p5, %p5105_p3 }
  0x86   : > { %vm789_vm10 = vcmp.ge.s32.totalorder %v5485_v7, 0  ;;  %vm799_vm12 = vcmp.lt.s32.totalorder %v5485_v7, 16 }
  0x87   : > { %vm5567_vm6 = vmand %vm789_vm10, %vm799_vm12  ;;  %p5108_p7 = pnand %p5107_p2, %p5101_p8 }
  0x88   : > { %4555 = vmatpush3.bf16.msra.mxu0 %v4781_v8  ;;  %4263 = vmatpush3.bf16.msra.mxu1 %v4813_v41 }
  0x89   : > { %4316 = vmatprep.subr.bf16.mxu0 %v4794_v19  ;;  %4264 = vmatprep.subr.bf16.mxu1 %v4816_v43  ;;  %v5496_v19 = vadd.s32 5, %v5454_v53 }
  0x8b   : > { %4557 = vmatmul.mubr.bf16.vlgmr.msra.gmra.mxu0 %v444_v9  ;;  %vm790_vm14 = vcmp.ge.s32.totalorder %v5496_v19, 0  ;;  %vm800_vm15 = vcmp.lt.s32.totalorder %v5496_v19, 16 }
  0x8c   : > { %4560 = vmatprep.mubr.bf16.mxu0 %v446_v10  ;;  %4317 = vmatpush3.bf16.msra.mxu0 %v4795_v21 }
  0x8d   : > { %4318 = vmatprep.subr.bf16.mxu0 %v4798_v23  ;;  %4265 = vmatpush3.bf16.msra.mxu1 %v4817_v45 }
  0x8e   : > { %4266 = vmatprep.subr.bf16.mxu1 %v4820_v47 }
  0x90   : > { %4319 = vmatpush3.bf16.msra.mxu0 %v4799_v25 }
  0x91   : > { %4320 = vmatprep.subr.bf16.mxu0 %v4802_v28  ;;  %4267 = vmatpush3.bf16.msra.mxu1 %v4821_v49  ;;  %v5514_v28 = vadd.s32 7, %v5454_v53 }
  0x92   : > { %4380 = vmatprep.subr.bf16.mxu1 %v4830_v51 }
  0x93   : > { %4561 = vmatmul.mubr.bf16.gmra.mxu0 %v448_v11  ;;  %vm792_vm2 = vcmp.ge.s32.totalorder %v5514_v28, 0  ;;  %vm802_vm3 = vcmp.lt.s32.totalorder %v5514_v28, 16 }
  0x94   : > { %4564 = vmatprep.mubr.bf16.mxu0 %v450_v12  ;;  %4321 = vmatpush3.bf16.msra.mxu0 %v4803_v30  ;;  %vm5592_vm9 = vmand %vm792_vm2, %vm802_vm3 }
  0x95   : > { %4322 = vmatprep.subr.bf16.mxu0 %v4806_v32 }
  0x98   : > { %4323 = vmatpush3.bf16.msra.mxu0 %v4807_v34 }
  0x99   : > { %4324 = vmatprep.subr.bf16.mxu0 %v4810_v36 }
  0x9b   : > { %4565 = vmatmul.mubr.bf16.gmra.mxu0 %v452_v13 }
  0x9c   : > { %4568 = vmatprep.mubr.bf16.mxu0 %v454_v14  ;;  %4325 = vmatpush3.bf16.msra.mxu0 %v4811_v38 }
  0x9d   : > { %4326 = vmatprep.subr.bf16.mxu0 %v4814_v40 }
  0xa0   : > { %4327 = vmatpush3.bf16.msra.mxu0 %v4815_v42 }
  0xa1   : > { %4328 = vmatprep.subr.bf16.mxu0 %v4818_v44 }
  0xa3   : > { %4569 = vmatmul.mubr.bf16.gmra.mxu0 %v456_v15 }
  0xa4   : > { %4572 = vmatprep.mubr.bf16.mxu0 %v458_v16  ;;  %4329 = vmatpush3.bf16.msra.mxu0 %v4819_v46 }
  0xa5   : > { %4330 = vmatprep.subr.bf16.mxu0 %v4822_v48 }
  0xa8   : > { %4331 = vmatpush3.bf16.msra.mxu0 %v4823_v50 }
  0xa9   : > { %4444 = vmatprep.subr.bf16.mxu0 %v4860_v52 }
  0xab   : > { %4573 = vmatmul.mubr.bf16.gmra.mxu0 %v4791_v17 }
 0x14b   : > { %v4558_v56 = vpop.f32.mrf.mxu0 }
 0x14c   : > { %v708_v58 = vmul.f32 %v4558_v56, %v5460_v55  ;;  %v5545_v56 = vadd.s32 8, %v5454_v53 }
 0x14d   : > { %v620_v59 = vpop.f32.mrf.mxu0 }
 0x14e   : > { %v735_v60 = vadd.f32 %v5465_v57, %v708_v58  ;;  %v706_v61 = vmul.f32 %v5460_v55, %v620_v59  ;;  %vm793_vm10 = vcmp.ge.s32.totalorder %v5545_v56, 0 }
 0x14f   : > { %v4559_v63 = vpop.f32.mrf.mxu0 }
 0x150   : > { %v755_v1 = vmax.f32 %v735_v60, 0.0  ;;  %v733_v2 = vadd.f32 %v5465_v57, %v706_v61  ;;  %v709_v3 = vmul.f32 %v4559_v63, %v5460_v55 }
 0x151   : > { %v623_v5 = vpop.f32.mrf.mxu0 }
 0x152   : > { %v837_v8 = vsel %vm5472_vm4, %v755_v1, 0.0  ;;  %v753_v9 = vmax.f32 %v733_v2, 0.0  ;;  %v736_v10 = vadd.f32 %v5465_v57, %v709_v3  ;;  %v707_v11 = vmul.f32 %v5460_v55, %v623_v5 }
 0x153   : > { %877 = vst [vmem:[#allocation2 + $0x19] sm:$0xff] %v837_v8  ;;  %v4107_v12 = vpack.c.bf16 %v837_v8, %v837_v8  ;;  %v4562_v13 = vpop.f32.mrf.mxu0 }
 0x154   : > { %v835_v14 = vsel %vm5479_vm5, %v753_v9, 0.0  ;;  %v756_v15 = vmax.f32 %v736_v10, 0.0  ;;  %v734_v16 = vadd.f32 %v5465_v57, %v707_v11  ;;  %v712_v17 = vmul.f32 %v4562_v13, %v5460_v55 }
 0x155   : > { %1073 = vst [vmem:[#allocation3 + $0x4c] sm:$0xf] %v4107_v12  ;;  %1360 = vst [vmem:[#allocation3 + $0x10] sm:$0xf] %v4107_v12  ;;  %v636_v18 = vpop.f32.mrf.mxu0 }
 0x156   : > { %875 = vst [vmem:[#allocation2 + $0x1] sm:$0xff] %v835_v14  ;;  %v838_v21 = vsel %vm5472_vm4, %v756_v15, 0.0  ;;  %v754_v22 = vmax.f32 %v734_v16, 0.0  ;;  %v739_v23 = vadd.f32 %v5465_v57, %v712_v17  ;;  %v710_v24 = vmul.f32 %v5460_v55, %v636_v18 }
 0x157   : > { %878 = vst [vmem:[#allocation2 + $0x21] sm:$0xff] %v838_v21  ;;  %v4108_v25 = vpack.c.bf16 %v838_v21, %v838_v21  ;;  %v4563_v27 = vpop.f32.mrf.mxu0  ;;  %vm794_vm4 = vcmp.ge.s32.totalorder %v5517_v29, 0 }
 0x158   : > { %v836_v30 = vsel %vm5479_vm5, %v754_v22, 0.0  ;;  %v759_v31 = vmax.f32 %v739_v23, 0.0  ;;  %v737_v32 = vadd.f32 %v5465_v57, %v710_v24  ;;  %v713_v33 = vmul.f32 %v4563_v27, %v5460_v55  ;;  %vm5555_vm5 = vmand %vm790_vm14, %vm800_vm15 }
 0x159   : > { %1074 = vst [vmem:[#allocation3 + $0x70] sm:$0xf] %v4108_v25  ;;  %1361 = vst [vmem:[#allocation3 + $0x34] sm:$0xf] %v4108_v25  ;;  %v639_v35 = vpop.f32.mrf.mxu0 }
 0x15a   : > { %876 = vst [vmem:[#allocation2 + $0x9] sm:$0xff] %v836_v30  ;;  %v897_v36 = vld [vmem:[#allocation2 + $0x18] sm:$0xff]  ;;  %v841_v37 = vsel %vm5508_vm11, %v759_v31, 0.0  ;;  %v757_v38 = vmax.f32 %v737_v32, 0.0  ;;  %v740_v39 = vadd.f32 %v5465_v57, %v713_v33  ;;  %v711_v40 = vmul.f32 %v5460_v55, %v639_v35  ;;  %vm5606_vm12 = vmand %vm794_vm4, %vm804_vm7 }
 0x15b   : > { %v4091_v41 = vpack.c.bf16 %v897_v36, %v897_v36  ;;  %881 = vst [vmem:[#allocation2 + $0x49] sm:$0xff] %v841_v37  ;;  %v4111_v42 = vpack.c.bf16 %v841_v37, %v841_v37  ;;  %v4566_v43 = vpop.f32.mrf.mxu0 }
 0x15c   : > { %v839_v44 = vsel %vm5525_vm13, %v757_v38, 0.0  ;;  %v760_v45 = vmax.f32 %v740_v39, 0.0  ;;  %v738_v46 = vadd.f32 %v5465_v57, %v711_v40  ;;  %v716_v47 = vmul.f32 %v4566_v43, %v5460_v55 }
 0x15d   : > { %v895_v48 = vld [vmem:[#allocation2] sm:$0xff]  ;;  %977 = vst [vmem:[#allocation3 + $0x48] sm:$0xf] %v4091_v41  ;;  %1264 = vst [vmem:[#allocation3 + $0xc] sm:$0xf] %v4091_v41  ;;  %v4109_v50 = vpack.c.bf16 %v839_v44, %v839_v44  ;;  %v652_v51 = vpop.f32.mrf.mxu0 }
 0x15e   : > { %v991_v49 = vld [vmem:[#allocation2 + $0x1] sm:$0xff]  ;;  %1077 = vst [vmem:[#allocation3 + $0xdc] sm:$0xf] %v4111_v42  ;;  %1364 = vst [vmem:[#allocation3 + $0xa0] sm:$0xf] %v4111_v42  ;;  %v4089_v52 = vpack.c.bf16 %v895_v48, %v895_v48  ;;  %v842_v61 = vsel %vm5508_vm11, %v760_v45, 0.0  ;;  %v743_v63 = vadd.f32 %v5465_v57, %v716_v47  ;;  %v714_v0 = vmul.f32 %v5460_v55, %v652_v51 }
 0x15f   : > { %1651 = vst [vmem:[#allocation3 + $0x64] sm:$0xf] %v4111_v42  ;;  %879 = vst [vmem:[#allocation2 + $0x31] sm:$0xff] %v839_v44  ;;  %v4105_v54 = vpack.c.bf16 %v991_v49, %v991_v49  ;;  %v898_v58 = vld [vmem:[#allocation2 + $0x20] sm:$0xff]  ;;  %v758_v62 = vmax.f32 %v738_v46, 0.0  ;;  %v4112_v53 = vpack.c.bf16 %v842_v61, %v842_v61  ;;  %v4567_v5 = vpop.f32.mrf.mxu0  ;;  %vm803_vm11 = vcmp.lt.s32.totalorder %v5545_v56, 16 }
 0x160   : > { %v1089_v59 = vld [vmem:[#allocation2 + $0x1a] sm:$0xff]  ;;  %v1090_v60 = vld [vmem:[#allocation2 + $0x22] sm:$0xff]  ;;  %v4092_v1 = vpack.c.bf16 %v898_v58, %v898_v58  ;;  %1075 = vst [vmem:[#allocation3 + $0x94] sm:$0xf] %v4109_v50  ;;  %1362 = vst [vmem:[#allocation3 + $0x58] sm:$0xf] %v4109_v50  ;;  %v741_v11 = vadd.f32 %v5465_v57, %v714_v0  ;;  %v717_v12 = vmul.f32 %v4567_v5, %v5460_v55 }
 0x161   : > { %v4123_v2 = vpack.c.bf16 %v1089_v59, %v1089_v59  ;;  %v4124_v3 = vpack.c.bf16 %v1090_v60, %v1090_v60  ;;  %1649 = vst [vmem:[#allocation3 + $0x1c] sm:$0xf] %v4109_v50  ;;  %882 = vst [vmem:[#allocation2 + $0x51] sm:$0xff] %v842_v61  ;;  %v1087_v6 = vld [vmem:[#allocation2 + $0x2] sm:$0xff]  ;;  %v1088_v8 = vld [vmem:[#allocation2 + $0xa] sm:$0xff]  ;;  %v840_v9 = vsel %vm5525_vm13, %v758_v62, 0.0  ;;  %v655_v18 = vpop.f32.mrf.mxu0 }
 0x162   : > { %975 = vst [vmem:[#allocation3] sm:$0xf] %v4089_v52  ;;  %1071 = vst [vmem:[#allocation3 + $0x4] sm:$0xf] %v4105_v54  ;;  %v763_v10 = vmax.f32 %v743_v63, 0.0  ;;  %v896_v13 = vld [vmem:[#allocation2 + $0x8] sm:$0xff]  ;;  %v4121_v14 = vpack.c.bf16 %v1087_v6, %v1087_v6  ;;  %v4122_v15 = vpack.c.bf16 %v1088_v8, %v1088_v8  ;;  %v4110_v16 = vpack.c.bf16 %v840_v9, %v840_v9 }
 0x163   : > { %978 = vst [vmem:[#allocation3 + $0x6c] sm:$0xf] %v4092_v1  ;;  %1169 = vst [vmem:[#allocation3 + $0x50] sm:$0xf] %v4123_v2  ;;  %v4090_v19 = vpack.c.bf16 %v896_v13, %v896_v13  ;;  %v992_v21 = vld [vmem:[#allocation2 + $0x9] sm:$0xff]  ;;  %v761_v24 = vmax.f32 %v741_v11, 0.0  ;;  %v744_v25 = vadd.f32 %v5465_v57, %v717_v12  ;;  %v715_v26 = vmul.f32 %v5460_v55, %v655_v18  ;;  %v4570_v30 = vpop.f32.mrf.mxu0 }
 0x164   : > { %1170 = vst [vmem:[#allocation3 + $0x74] sm:$0xf] %v4124_v3  ;;  %1265 = vst [vmem:[#allocation3 + $0x30] sm:$0xf] %v4092_v1  ;;  %v901_v22 = vld [vmem:[#allocation2 + $0x48] sm:$0xff]  ;;  %v845_v23 = vsel %vm5555_vm5, %v763_v10, 0.0  ;;  %v4106_v31 = vpack.c.bf16 %v992_v21, %v992_v21  ;;  %v720_v36 = vmul.f32 %v4570_v30, %v5460_v55 }
 0x165   : > { %1456 = vst [vmem:[#allocation3 + $0x14] sm:$0xf] %v4123_v2  ;;  %1457 = vst [vmem:[#allocation3 + $0x38] sm:$0xf] %v4124_v3  ;;  %v4095_v27 = vpack.c.bf16 %v901_v22, %v901_v22  ;;  %v4115_v7 = vpack.c.bf16 %v845_v23, %v845_v23  ;;  %v843_v33 = vsel %vm5567_vm6, %v761_v24, 0.0  ;;  %v764_v34 = vmax.f32 %v744_v25, 0.0  ;;  %v668_v20 = vpop.f32.mrf.mxu0 }
 0x166   : > { %1078 = vst [vmem:[#allocation3 + $0x100] sm:$0xf] %v4112_v53  ;;  %1365 = vst [vmem:[#allocation3 + $0xc4] sm:$0xf] %v4112_v53  ;;  %v899_v32 = vld [vmem:[#allocation2 + $0x30] sm:$0xff]  ;;  %v742_v35 = vadd.f32 %v5465_v57, %v715_v26  ;;  %v4113_v39 = vpack.c.bf16 %v843_v33, %v843_v33  ;;  %v747_v46 = vadd.f32 %v5465_v57, %v720_v36  ;;  %v5626_v10 = vld [vmem:[#allocation9 + $0x1b8] sm:$0xff]  }
 0x167   : > { %1652 = vst [vmem:[#allocation3 + $0x88] sm:$0xf] %v4112_v53  ;;  %880 = vst [vmem:[#allocation2 + $0x39] sm:$0xff] %v840_v9  ;;  %v4093_v38 = vpack.c.bf16 %v899_v32, %v899_v32  ;;  %v846_v44 = vsel %vm5555_vm5, %v764_v34, 0.0  ;;  %v718_v28 = vmul.f32 %v5460_v55, %v668_v20  ;;  %v4571_v51 = vpop.f32.mrf.mxu0  ;;  %v4862_v53 = vld [vmem:[#allocation9 + $0x158] sm:$0xff]  }
 0x168   : > { %1167 = vst [vmem:[#allocation3 + $0x8] sm:$0xf] %v4121_v14  ;;  %1168 = vst [vmem:[#allocation3 + $0x2c] sm:$0xf] %v4122_v15  ;;  %v902_v41 = vld [vmem:[#allocation2 + $0x50] sm:$0xff]  ;;  %v762_v45 = vmax.f32 %v742_v35, 0.0  ;;  %v4116_v50 = vpack.c.bf16 %v846_v44, %v846_v44  ;;  %v721_v63 = vmul.f32 %v4571_v51, %v5460_v55 }
 0x169   : > { %1076 = vst [vmem:[#allocation3 + $0xb8] sm:$0xf] %v4110_v16  ;;  %1363 = vst [vmem:[#allocation3 + $0x7c] sm:$0xf] %v4110_v16  ;;  %v1093_v42 = vld [vmem:[#allocation2 + $0x4a] sm:$0xff]  ;;  %v1094_v43 = vld [vmem:[#allocation2 + $0x52] sm:$0xff]  ;;  %v4096_v47 = vpack.c.bf16 %v902_v41, %v902_v41  ;;  %v745_v62 = vadd.f32 %v5465_v57, %v718_v28  ;;  %v671_v3 = vpop.f32.mrf.mxu0 }
 0x16a   : > { %1650 = vst [vmem:[#allocation3 + $0x40] sm:$0xf] %v4110_v16  ;;  %885 = vst [vmem:[#allocation2 + $0x79] sm:$0xff] %v845_v23  ;;  %v4127_v48 = vpack.c.bf16 %v1093_v42, %v1093_v42  ;;  %v4128_v49 = vpack.c.bf16 %v1094_v43, %v1094_v43  ;;  %v844_v60 = vsel %vm5567_vm6, %v762_v45, 0.0  ;;  %v767_v61 = vmax.f32 %v747_v46, 0.0  ;;  %v5628_v14 = vld [vmem:[#allocation9 + $0x138] sm:$0xff]  }
 0x16b   : > { %976 = vst [vmem:[#allocation3 + $0x24] sm:$0xf] %v4090_v19  ;;  %981 = vst [vmem:[#allocation3 + $0xd8] sm:$0xf] %v4095_v27  ;;  %v4114_v2 = vpack.c.bf16 %v844_v60, %v844_v60  ;;  %v765_v6 = vmax.f32 %v745_v62, 0.0  ;;  %v748_v8 = vadd.f32 %v5465_v57, %v721_v63  ;;  %v719_v9 = vmul.f32 %v5460_v55, %v671_v3  ;;  %v4574_v15 = vpop.f32.mrf.mxu0  ;;  %v5634_v23 = vld [vmem:[#allocation9 + $0x170] sm:$0xff]  }
 0x16c   : > { %1268 = vst [vmem:[#allocation3 + $0x9c] sm:$0xf] %v4095_v27  ;;  %1555 = vst [vmem:[#allocation3 + $0x60] sm:$0xf] %v4095_v27  ;;  %v849_v5 = vsel %vm5592_vm9, %v767_v61, 0.0  ;;  %v724_v22 = vmul.f32 %v4574_v15, %v5460_v55  ;;  %v5644_v43 = vld [vmem:[#allocation9 + $0x130] sm:$0xff]  }
 0x16d   : > { %1081 = vst [vmem:[#allocation3 + $0x16c] sm:$0xf] %v4115_v7  ;;  %1368 = vst [vmem:[#allocation3 + $0x130] sm:$0xf] %v4115_v7  ;;  %v4119_v11 = vpack.c.bf16 %v849_v5, %v849_v5  ;;  %v4829_v13 = vld [vmem:[#allocation3 + $0xc] ss:$36 sps:$4 sm:$0xff]   ;;  %v746_v19 = vadd.f32 %v5465_v57, %v719_v9  ;;  %v684_v27 = vpop.f32.mrf.mxu0 }
 0x16e   : > { %1655 = vst [vmem:[#allocation3 + $0xf4] sm:$0xf] %v4115_v7  ;;  %883 = vst [vmem:[#allocation2 + $0x61] sm:$0xff] %v843_v33  ;;  %v900_v54 = vld [vmem:[#allocation2 + $0x38] sm:$0xff]  ;;  %v847_v17 = vsel %vm5584_vm8, %v765_v6, 0.0  ;;  %v768_v18 = vmax.f32 %v748_v8, 0.0  ;;  %2914 = vmatprep.mubr.bf16.mxu0 %v4829_v13  ;;  %v751_v35 = vadd.f32 %v5465_v57, %v724_v22  ;;  %v722_v36 = vmul.f32 %v5460_v55, %v684_v27 }
 0x16f   : > { %1072 = vst [vmem:[#allocation3 + $0x28] sm:$0xf] %v4106_v31  ;;  %979 = vst [vmem:[#allocation3 + $0x90] sm:$0xf] %v4093_v38  ;;  %v1091_v58 = vld [vmem:[#allocation2 + $0x32] sm:$0xff]  ;;  %v1092_v59 = vld [vmem:[#allocation2 + $0x3a] sm:$0xff]  ;;  %v4094_v29 = vpack.c.bf16 %v900_v54, %v900_v54  ;;  %v4117_v25 = vpack.c.bf16 %v847_v17, %v847_v17 }
 0x170   : > { %1266 = vst [vmem:[#allocation3 + $0x54] sm:$0xf] %v4093_v38  ;;  %1553 = vst [vmem:[#allocation3 + $0x18] sm:$0xf] %v4093_v38  ;;  %v4125_v0 = vpack.c.bf16 %v1091_v58, %v1091_v58  ;;  %v4126_v1 = vpack.c.bf16 %v1092_v59, %v1092_v59  ;;  %v4827_v12 = vld [vmem:[#allocation3 + $0x8] ss:$36 sps:$4 sm:$0xff]  }
 0x171   : > { %1079 = vst [vmem:[#allocation3 + $0x124] sm:$0xf] %v4113_v39  ;;  %1366 = vst [vmem:[#allocation3 + $0xe8] sm:$0xf] %v4113_v39  ;;  %v905_v4 = vld [vmem:[#allocation2 + $0x78] sm:$0xff]  ;;  %v5636_v7 = vld [vmem:[#allocation9 + $0x1f0] sm:$0xff]   ;;  %2915 = vmatmul.mubr.bf16.vlgmr.msra.gmra.mxu0 %v4827_v12 }
 0x172   : > { %1653 = vst [vmem:[#allocation3 + $0xac] sm:$0xf] %v4113_v39  ;;  %886 = vst [vmem:[#allocation2 + $0x81] sm:$0xff] %v846_v44  ;;  %v4099_v56 = vpack.c.bf16 %v905_v4, %v905_v4  ;;  %v4824_v21 = vld [vmem:[#allocation3] ss:$36 sps:$4 sm:$0xff]   ;;  %v850_v33 = vsel %vm5592_vm9, %v768_v18, 0.0  ;;  %v4575_v44 = vpop.f32.mrf.mxu0  ;;  %4445 = vmatpush3.bf16.msra.mxu0 %v5626_v10 }
 0x173   : > { %1747 = vst [vmem:[#allocation3 + $0x68] sm:$0xf] %v4127_v48  ;;  %1748 = vst [vmem:[#allocation3 + $0x8c] sm:$0xf] %v4128_v49  ;;  %v766_v34 = vmax.f32 %v746_v19, 0.0  ;;  %v5642_v38 = vld [vmem:[#allocation9 + $0x1b0] sm:$0xff]   ;;  %v4120_v40 = vpack.c.bf16 %v850_v33, %v850_v33  ;;  %4446 = vmatprep.subr.bf16.mxu0 %v5636_v7 }
 0x174   : > { %982 = vst [vmem:[#allocation3 + $0xfc] sm:$0xf] %v4096_v47  ;;  %1173 = vst [vmem:[#allocation3 + $0xe0] sm:$0xf] %v4127_v48  ;;  %v4832_v42 = vld [vmem:[#allocation3 + $0x4c] ss:$36 sps:$4 sm:$0xff]   ;;  %v687_v59 = vpop.f32.mrf.mxu0 }
 0x175   : > { %1174 = vst [vmem:[#allocation3 + $0x104] sm:$0xf] %v4128_v49  ;;  %1269 = vst [vmem:[#allocation3 + $0xc0] sm:$0xf] %v4096_v47  ;;  %v903_v16 = vld [vmem:[#allocation2 + $0x60] sm:$0xff]  ;;  %v4876_v61 = vld [vmem:[#allocation9 + $0x1e8] sm:$0xff]  }
 0x176   : > { %1460 = vst [vmem:[#allocation3 + $0xa4] sm:$0xf] %v4127_v48  ;;  %1461 = vst [vmem:[#allocation3 + $0xc8] sm:$0xf] %v4128_v49  ;;  %v4097_v24 = vpack.c.bf16 %v903_v16, %v903_v16  ;;  %v4826_v26 = vld [vmem:[#allocation3 + $0x4] ss:$36 sps:$4 sm:$0xff]   ;;  %v749_v49 = vadd.f32 %v5465_v57, %v722_v36  ;;  %4447 = vmatpush3.bf16.msra.mxu0 %v5642_v38 }
 0x177   : > { %1556 = vst [vmem:[#allocation3 + $0x84] sm:$0xf] %v4096_v47  ;;  %1082 = vst [vmem:[#allocation3 + $0x190] sm:$0xf] %v4116_v50  ;;  %2817 = vmatprep.mubr.bf16.mxu1 %v4826_v26  ;;  %v848_v47 = vsel %vm5584_vm8, %v766_v34, 0.0  ;;  %v771_v48 = vmax.f32 %v751_v35, 0.0  ;;  %4448 = vmatprep.subr.bf16.mxu0 %v4876_v61 }
 0x178   : > { %1369 = vst [vmem:[#allocation3 + $0x154] sm:$0xf] %v4116_v50  ;;  %1656 = vst [vmem:[#allocation3 + $0x118] sm:$0xf] %v4116_v50  ;;  %2818 = vmatmul.mubr.bf16.vlgmr.msra.gmra.mxu1 %v4824_v21  ;;  %v725_v50 = vmul.f32 %v4575_v44, %v5460_v55  ;;  %v4118_v58 = vpack.c.bf16 %v848_v47, %v848_v47  ;;  %v4881_v6 = vld [vmem:[#allocation9 + $0x1a8] sm:$0xff]   ;;  %v4888_v38 = vld [vmem:[#allocation9 + $0x1d8] sm:$0xff]  }
 0x179   : > { %884 = vst [vmem:[#allocation2 + $0x69] sm:$0xff] %v844_v60  ;;  %vm5618_vm13 = vmand %vm793_vm10, %vm803_vm11  ;;  %v906_v30 = vld [vmem:[#allocation2 + $0x80] sm:$0xff]  ;;  %4381 = vmatpush3.bf16.msra.mxu1 %v5628_v14  ;;  %v4844_v60 = vld [vmem:[#allocation9 + $0x168] sm:$0xff]   ;;  %2825 = vmatprep.mubr.bf16.mxu1 %v4832_v42  ;;  %v853_v63 = vsel %vm5606_vm12, %v771_v48, 0.0 }
 0x17a   : > { %980 = vst [vmem:[#allocation3 + $0xb4] sm:$0xf] %v4094_v29  ;;  %1171 = vst [vmem:[#allocation3 + $0x98] sm:$0xf] %v4125_v0  ;;  %v1097_v31 = vld [vmem:[#allocation2 + $0x7a] sm:$0xff]  ;;  %v1098_v32 = vld [vmem:[#allocation2 + $0x82] sm:$0xff]  ;;  %v4100_v39 = vpack.c.bf16 %v906_v30, %v906_v30  ;;  %4382 = vmatprep.subr.bf16.mxu1 %v5634_v23  ;;  %v4215_v4 = vpack.c.bf16 %v853_v63, %v853_v63  ;;  %4449 = vmatpush3.bf16.msra.mxu0 %v4881_v6 }
 0x17b   : > { %1172 = vst [vmem:[#allocation3 + $0xbc] sm:$0xf] %v4126_v1  ;;  %1267 = vst [vmem:[#allocation3 + $0x78] sm:$0xf] %v4094_v29  ;;  %v4131_v20 = vpack.c.bf16 %v1097_v31, %v1097_v31  ;;  %v4132_v41 = vpack.c.bf16 %v1098_v32, %v1098_v32  ;;  %v4837_v13 = vld [vmem:[#allocation3 + $0x48] ss:$36 sps:$4 sm:$0xff]  }
 0x17c   : > { %1458 = vst [vmem:[#allocation3 + $0x5c] sm:$0xf] %v4125_v0  ;;  %1459 = vst [vmem:[#allocation3 + $0x80] sm:$0xf] %v4126_v1  ;;  %v4840_v15 = vld [vmem:[#allocation3 + $0x94] ss:$36 sps:$4 sm:$0xff]  }
 0x17d   : > { %1554 = vst [vmem:[#allocation3 + $0x3c] sm:$0xf] %v4094_v29  ;;  %1745 = vst [vmem:[#allocation3 + $0x20] sm:$0xf] %v4125_v0  ;;  %v769_v0 = vmax.f32 %v749_v49, 0.0  ;;  %4383 = vmatpush3.bf16.msra.mxu1 %v5644_v43  ;;  %v4883_v23 = vld [vmem:[#allocation9 + $0x1a0] sm:$0xff]  }
 0x17e   : > { %1746 = vst [vmem:[#allocation3 + $0x44] sm:$0xf] %v4126_v1  ;;  %1080 = vst [vmem:[#allocation3 + $0x148] sm:$0xf] %v4114_v2  ;;  %v752_v1 = vadd.f32 %v5465_v57, %v725_v50  ;;  %v4842_v16 = vld [vmem:[#allocation3 + $0x9c] ss:$36 sps:$4 sm:$0xff]   ;;  %4384 = vmatprep.subr.bf16.mxu1 %v4844_v60 }
 0x17f   : > { %1367 = vst [vmem:[#allocation3 + $0x10c] sm:$0xf] %v4114_v2  ;;  %1654 = vst [vmem:[#allocation3 + $0xd0] sm:$0xf] %v4114_v2  ;;  %v723_v2 = vmul.f32 %v5460_v55, %v687_v59  ;;  %v851_v8 = vsel %vm5618_vm13, %v769_v0, 0.0  ;;  %v4855_v32 = vld [vmem:[#allocation9 + $0x120] sm:$0xff]  }
 0x180   : > { %889 = vst [vmem:[#allocation2 + $0xa9] sm:$0xff] %v849_v5  ;;  %985 = vst [vmem:[#allocation3 + $0x168] sm:$0xf] %v4099_v56  ;;  %v904_v45 = vld [vmem:[#allocation2 + $0x68] sm:$0xff]  ;;  %v4838_v5 = vld [vmem:[#allocation3 + $0x50] ss:$36 sps:$4 sm:$0xff]   ;;  %v4167_v14 = vpack.c.bf16 %v851_v8, %v851_v8  ;;  %2826 = vmatmul.mubr.bf16.gmra.mxu1 %v4837_v13 }
 0x181   : > { %1272 = vst [vmem:[#allocation3 + $0x12c] sm:$0xf] %v4099_v56  ;;  %1559 = vst [vmem:[#allocation3 + $0xf0] sm:$0xf] %v4099_v56  ;;  %v1095_v46 = vld [vmem:[#allocation2 + $0x62] sm:$0xff]  ;;  %v1096_v28 = vld [vmem:[#allocation2 + $0x6a] sm:$0xff]  ;;  %v4098_v51 = vpack.c.bf16 %v904_v45, %v904_v45  ;;  %v750_v10 = vadd.f32 %v5465_v57, %v723_v2  ;;  %2833 = vmatprep.mubr.bf16.mxu1 %v4840_v15 }
 0x182   : > { %1085 = vst [vmem:[#allocation3 + $0x1fc] sm:$0xf] %v4119_v11  ;;  %1372 = vst [vmem:[#allocation3 + $0x1c0] sm:$0xf] %v4119_v11  ;;  %v4129_v37 = vpack.c.bf16 %v1095_v46, %v1095_v46  ;;  %v4130_v54 = vpack.c.bf16 %v1096_v28, %v1096_v28  ;;  %v4834_v29 = vld [vmem:[#allocation3 + $0x54] ss:$36 sps:$4 sm:$0xff]  }
 0x183   : > { %1659 = vst [vmem:[#allocation3 + $0x184] sm:$0xf] %v4119_v11  ;;  %887 = vst [vmem:[#allocation2 + $0x91] sm:$0xff] %v847_v17  ;;  %2922 = vmatprep.mubr.bf16.mxu0 %v4834_v29  ;;  %v772_v9 = vmax.f32 %v752_v1, 0.0  ;;  %v4847_v56 = vld [vmem:[#allocation9 + $0x128] sm:$0xff]   ;;  %v4882_v11 = vld [vmem:[#allocation9 + $0x1e0] sm:$0xff]  }
 0x184   : > { %983 = vst [vmem:[#allocation3 + $0x120] sm:$0xf] %v4097_v24  ;;  %1270 = vst [vmem:[#allocation3 + $0xe4] sm:$0xf] %v4097_v24  ;;  %v4852_v17 = vld [vmem:[#allocation9 + $0x160] sm:$0xff]   ;;  %2923 = vmatmul.mubr.bf16.gmra.mxu0 %v4838_v5  ;;  %v770_v22 = vmax.f32 %v750_v10, 0.0  ;;  %4385 = vmatpush3.bf16.msra.mxu1 %v4847_v56 }
 0x185   : > { %1557 = vst [vmem:[#allocation3 + $0xa8] sm:$0xf] %v4097_v24  ;;  %1083 = vst [vmem:[#allocation3 + $0x1b4] sm:$0xf] %v4117_v25  ;;  %v854_v21 = vsel %vm5606_vm12, %v772_v9, 0.0  ;;  %2930 = vmatprep.mubr.bf16.mxu0 %v4842_v16  ;;  %4450 = vmatprep.subr.bf16.mxu0 %v4882_v11  ;;  %v4894_v42 = vld [vmem:[#allocation9 + $0x1d0] sm:$0xff]  }
 0x186   : > { %1370 = vst [vmem:[#allocation3 + $0x178] sm:$0xf] %v4117_v25  ;;  %1657 = vst [vmem:[#allocation3 + $0x13c] sm:$0xf] %v4117_v25  ;;  %v4216_v27 = vpack.c.bf16 %v854_v21, %v854_v21  ;;  %v852_v52 = vsel %vm5618_vm13, %v770_v22, 0.0  ;;  %4386 = vmatprep.subr.bf16.mxu1 %v4852_v17  ;;  %v4865_v44 = vld [vmem:[#allocation9 + $0x118] sm:$0xff]   ;;  %4451 = vmatpush3.bf16.msra.mxu0 %v4883_v23 }
 0x187   : > { %890 = vst [vmem:[#allocation2 + $0xb1] sm:$0xff] %v850_v33  ;;  %986 = vst [vmem:[#allocation3 + $0x18c] sm:$0xf] %v4100_v39  ;;  %v909_v62 = vld [vmem:[#allocation2 + $0xa8] sm:$0xff]  ;;  %v4168_v36 = vpack.c.bf16 %v852_v52, %v852_v52  ;;  %v4845_v46 = vld [vmem:[#allocation3 + $0x90] ss:$36 sps:$4 sm:$0xff]   ;;  %4452 = vmatprep.subr.bf16.mxu0 %v4888_v38 }
 0x188   : > { %1177 = vst [vmem:[#allocation3 + $0x170] sm:$0xf] %v4131_v20  ;;  %1178 = vst [vmem:[#allocation3 + $0x194] sm:$0xf] %v4132_v41  ;;  %v4103_v3 = vpack.c.bf16 %v909_v62, %v909_v62  ;;  %v4848_v28 = vld [vmem:[#allocation3 + $0xdc] ss:$36 sps:$4 sm:$0xff]   ;;  %4387 = vmatpush3.bf16.msra.mxu1 %v4855_v32 }
 0x189   : > { %1273 = vst [vmem:[#allocation3 + $0x150] sm:$0xf] %v4100_v39  ;;  %1464 = vst [vmem:[#allocation3 + $0x134] sm:$0xf] %v4131_v20  ;;  %v4872_v48 = vld [vmem:[#allocation9 + $0x150] sm:$0xff]   ;;  %4388 = vmatprep.subr.bf16.mxu1 %v4862_v53  ;;  %2834 = vmatmul.mubr.bf16.gmra.mxu1 %v4845_v46  ;;  %v4900_v1 = vld [vmem:[#allocation9 + $0x1c8] sm:$0xff]  }
 0x18a   : > { %1465 = vst [vmem:[#allocation3 + $0x158] sm:$0xf] %v4132_v41  ;;  %1560 = vst [vmem:[#allocation3 + $0x114] sm:$0xf] %v4100_v39  ;;  %v907_v55 = vld [vmem:[#allocation2 + $0x90] sm:$0xff]  ;;  %2841 = vmatprep.mubr.bf16.mxu1 %v4848_v28  ;;  %v4875_v2 = vld [vmem:[#allocation9 + $0x110] sm:$0xff]  }
 0x18b   : > { %1751 = vst [vmem:[#allocation3 + $0xf8] sm:$0xf] %v4131_v20  ;;  %1752 = vst [vmem:[#allocation3 + $0x11c] sm:$0xf] %v4132_v41  ;;  %v4101_v12 = vpack.c.bf16 %v907_v55, %v907_v55  ;;  %v4893_v20 = vld [vmem:[#allocation9 + $0x198] sm:$0xff]   ;;  %v4887_v6 = vld [vmem:[#allocation9 + $0x108] sm:$0xff]  }
 0x18c   : > { %1086 = vst [vmem:[#allocation3 + $0x220] sm:$0xf] %v4120_v40  ;;  %1373 = vst [vmem:[#allocation3 + $0x1e4] sm:$0xf] %v4120_v40  ;;  %4453 = vmatpush3.bf16.msra.mxu0 %v4893_v20  ;;  %4389 = vmatpush3.bf16.msra.mxu1 %v4865_v44  ;;  %v4854_v5 = vld [vmem:[#allocation3 + $0xe0] ss:$36 sps:$4 sm:$0xff]  }
 0x18d   : > { %1660 = vst [vmem:[#allocation3 + $0x1a8] sm:$0xf] %v4120_v40  ;;  %888 = vst [vmem:[#allocation2 + $0x99] sm:$0xff] %v848_v47  ;;  %v4846_v40 = vld [vmem:[#allocation3 + $0x98] ss:$36 sps:$4 sm:$0xff]   ;;  %4454 = vmatprep.subr.bf16.mxu0 %v4894_v42  ;;  %4390 = vmatprep.subr.bf16.mxu1 %v4872_v48  ;;  %v4904_v55 = vld [vmem:[#allocation9 + $0x188] sm:$0xff]  }
 0x18e   : > { %984 = vst [vmem:[#allocation3 + $0x144] sm:$0xf] %v4098_v51  ;;  %1175 = vst [vmem:[#allocation3 + $0x128] sm:$0xf] %v4129_v37  ;;  %v910_v18 = vld [vmem:[#allocation2 + $0xb0] sm:$0xff]  ;;  %2931 = vmatmul.mubr.bf16.gmra.mxu0 %v4846_v40  ;;  %v4910_v13 = vld [vmem:[#allocation9 + $0x238] sm:$0xff]  }
 0x18f   : > { %1176 = vst [vmem:[#allocation3 + $0x14c] sm:$0xf] %v4130_v54  ;;  %1271 = vst [vmem:[#allocation3 + $0x108] sm:$0xf] %v4098_v51  ;;  %v1101_v57 = vld [vmem:[#allocation2 + $0xaa] sm:$0xff]  ;;  %v1102_v19 = vld [vmem:[#allocation2 + $0xb2] sm:$0xff]  ;;  %v4104_v24 = vpack.c.bf16 %v910_v18, %v910_v18 }
 0x190   : > { %1462 = vst [vmem:[#allocation3 + $0xec] sm:$0xf] %v4129_v37  ;;  %1463 = vst [vmem:[#allocation3 + $0x110] sm:$0xf] %v4130_v54  ;;  %v4135_v25 = vpack.c.bf16 %v1101_v57, %v1101_v57  ;;  %v4136_v26 = vpack.c.bf16 %v1102_v19, %v1102_v19  ;;  %v4908_v9 = vld [vmem:[#allocation9 + $0x1c0] sm:$0xff]   ;;  %4391 = vmatpush3.bf16.msra.mxu1 %v4875_v2  ;;  %v4943_v44 = vld [vmem:[#allocation9 + $0x210] sm:$0xff]  }
 0x191   : > { %1558 = vst [vmem:[#allocation3 + $0xcc] sm:$0xf] %v4098_v51  ;;  %1749 = vst [vmem:[#allocation3 + $0xb0] sm:$0xf] %v4129_v37  ;;  %v4895_v37 = vld [vmem:[#allocation9 + $0x190] sm:$0xff]   ;;  %v4909_v11 = vld [vmem:[#allocation9 + $0x180] sm:$0xff]  }
 0x192   : > { %1750 = vst [vmem:[#allocation3 + $0xd4] sm:$0xf] %v4130_v54  ;;  %1084 = vst [vmem:[#allocation3 + $0x1d8] sm:$0xf] %v4118_v58  ;;  %4455 = vmatpush3.bf16.msra.mxu0 %v4895_v37  ;;  %v4853_v10 = vld [vmem:[#allocation3 + $0xd8] ss:$36 sps:$4 sm:$0xff]  }
 0x193   : > { %1371 = vst [vmem:[#allocation3 + $0x19c] sm:$0xf] %v4118_v58  ;;  %1658 = vst [vmem:[#allocation3 + $0x160] sm:$0xf] %v4118_v58  ;;  %4456 = vmatprep.subr.bf16.mxu0 %v4900_v1  ;;  %v4856_v56 = vld [vmem:[#allocation3 + $0x124] ss:$36 sps:$4 sm:$0xff]   ;;  %2842 = vmatmul.mubr.bf16.gmra.mxu1 %v4853_v10 }
 0x194   : > { %893 = vst [vmem:[#allocation2 + $0xd9] sm:$0xff] %v853_v63  ;;  %989 = vst [vmem:[#allocation3 + $0x1f8] sm:$0xf] %v4103_v3  ;;  %v908_v7 = vld [vmem:[#allocation2 + $0x98] sm:$0xff]  ;;  %2849 = vmatprep.mubr.bf16.mxu1 %v4856_v56  ;;  %v4874_v57 = vld [vmem:[#allocation3 + $0x170] ss:$36 sps:$4 sm:$0xff]  }
 0x195   : > { %1276 = vst [vmem:[#allocation3 + $0x1bc] sm:$0xf] %v4103_v3  ;;  %1563 = vst [vmem:[#allocation3 + $0x180] sm:$0xf] %v4103_v3  ;;  %v1099_v30 = vld [vmem:[#allocation2 + $0x92] sm:$0xff]  ;;  %v1100_v31 = vld [vmem:[#allocation2 + $0x9a] sm:$0xff]  ;;  %v4102_v33 = vpack.c.bf16 %v908_v7, %v908_v7 }
 0x196   : > { %1663 = vst [vmem:[#allocation3 + $0x214] sm:$0xf] %v4215_v4  ;;  %891 = vst [vmem:[#allocation2 + $0xc1] sm:$0xff] %v851_v8  ;;  %v4133_v34 = vpack.c.bf16 %v1099_v30, %v1099_v30  ;;  %v4134_v35 = vpack.c.bf16 %v1100_v31, %v1100_v31  ;;  %v4850_v47 = vld [vmem:[#allocation3 + $0xe4] ss:$36 sps:$4 sm:$0xff]   ;;  %4457 = vmatpush3.bf16.msra.mxu0 %v4904_v55 }
 0x197   : > { %987 = vst [vmem:[#allocation3 + $0x1b0] sm:$0xf] %v4101_v12  ;;  %1274 = vst [vmem:[#allocation3 + $0x174] sm:$0xf] %v4101_v12  ;;  %2938 = vmatprep.mubr.bf16.mxu0 %v4850_v47  ;;  %v4884_v3 = vld [vmem:[#allocation9 + $0x148] sm:$0xff]   ;;  %v4896_v8 = vld [vmem:[#allocation9 + $0x140] sm:$0xff]   ;;  %4458 = vmatprep.subr.bf16.mxu0 %v4908_v9 }
 0x198   : > { %1561 = vst [vmem:[#allocation3 + $0x138] sm:$0xf] %v4101_v12  ;;  %1374 = vst [vmem:[#allocation3 + $0x208] sm:$0xf] %v4167_v14  ;;  %v4858_v4 = vld [vmem:[#allocation3 + $0x12c] ss:$36 sps:$4 sm:$0xff]   ;;  %2939 = vmatmul.mubr.bf16.gmra.mxu0 %v4854_v5  ;;  %4392 = vmatprep.subr.bf16.mxu1 %v4884_v3 }
 0x199   : > { %1661 = vst [vmem:[#allocation3 + $0x1cc] sm:$0xf] %v4167_v14  ;;  %894 = vst [vmem:[#allocation2 + $0xe1] sm:$0xff] %v854_v21  ;;  %2946 = vmatprep.mubr.bf16.mxu0 %v4858_v4  ;;  %4393 = vmatpush3.bf16.msra.mxu1 %v4887_v6  ;;  %v4899_v12 = vld [vmem:[#allocation9 + $0x100] sm:$0xff]   ;;  %v4864_v14 = vld [vmem:[#allocation3 + $0x128] ss:$36 sps:$4 sm:$0xff]  }
 0x19a   : > { %990 = vst [vmem:[#allocation3 + $0x21c] sm:$0xf] %v4104_v24  ;;  %1181 = vst [vmem:[#allocation3 + $0x200] sm:$0xf] %v4135_v25  ;;  %4394 = vmatprep.subr.bf16.mxu1 %v4896_v8  ;;  %4459 = vmatpush3.bf16.msra.mxu0 %v4909_v11  ;;  %v4863_v16 = vld [vmem:[#allocation3 + $0x120] ss:$36 sps:$4 sm:$0xff]  }
 0x19b   : > { %1182 = vst [vmem:[#allocation3 + $0x224] sm:$0xf] %v4136_v26  ;;  %1277 = vst [vmem:[#allocation3 + $0x1e0] sm:$0xf] %v4104_v24  ;;  %v1487_v39 = vld [vmem:[#allocation2 + $0xd8] sm:$0xff]  ;;  %2850 = vmatmul.mubr.bf16.gmra.mxu1 %v4863_v16  ;;  %v4968_v11 = vld [vmem:[#allocation10 + $0x38] sm:$0xff]  }
 0x19c   : > { %1468 = vst [vmem:[#allocation3 + $0x1c4] sm:$0xf] %v4135_v25  ;;  %1469 = vst [vmem:[#allocation3 + $0x1e8] sm:$0xf] %v4136_v26  ;;  %v4199_v41 = vpack.c.bf16 %v1487_v39, %v1487_v39  ;;  %v4866_v17 = vld [vmem:[#allocation3 + $0x16c] ss:$36 sps:$4 sm:$0xff]   ;;  %4608 = vmatprep.subr.bf16.mxu0 %v4968_v11 }
 0x19d   : > { %1564 = vst [vmem:[#allocation3 + $0x1a4] sm:$0xf] %v4104_v24  ;;  %1755 = vst [vmem:[#allocation3 + $0x188] sm:$0xf] %v4135_v25  ;;  %v1198_v43 = vld [vmem:[#allocation2 + $0xc0] sm:$0xff]  ;;  %4395 = vmatpush3.bf16.msra.mxu1 %v4899_v12  ;;  %2857 = vmatprep.mubr.bf16.mxu1 %v4866_v17  ;;  %v4929_v39 = vld [vmem:[#allocation9 + $0x220] sm:$0xff]  }
 0x19e   : > { %1756 = vst [vmem:[#allocation3 + $0x1ac] sm:$0xf] %v4136_v26  ;;  %1664 = vst [vmem:[#allocation3 + $0x238] sm:$0xf] %v4216_v27  ;;  %v4151_v45 = vpack.c.bf16 %v1198_v43, %v1198_v43  ;;  %4576 = vmatprep.subr.bf16.mxu1 %v4910_v13  ;;  %v4873_v19 = vld [vmem:[#allocation3 + $0x168] ss:$36 sps:$4 sm:$0xff]  }
 0x19f   : > { %892 = vst [vmem:[#allocation2 + $0xc9] sm:$0xff] %v852_v52  ;;  %988 = vst [vmem:[#allocation3 + $0x1d4] sm:$0xf] %v4102_v33  ;;  %v4877_v21 = vld [vmem:[#allocation3 + $0x1b4] ss:$36 sps:$4 sm:$0xff]   ;;  %v4950_v46 = vld [vmem:[#allocation9 + $0x208] sm:$0xff]  }
 0x1a0   : > { %1179 = vst [vmem:[#allocation3 + $0x1b8] sm:$0xf] %v4133_v34  ;;  %1180 = vst [vmem:[#allocation3 + $0x1dc] sm:$0xf] %v4134_v35  ;;  %v1488_v49 = vld [vmem:[#allocation2 + $0xe0] sm:$0xff]  ;;  %2947 = vmatmul.mubr.bf16.gmra.mxu0 %v4864_v14 }
 0x1a1   : > { %1275 = vst [vmem:[#allocation3 + $0x198] sm:$0xf] %v4102_v33  ;;  %1466 = vst [vmem:[#allocation3 + $0x17c] sm:$0xf] %v4133_v34  ;;  %v1679_v50 = vld [vmem:[#allocation2 + $0xda] sm:$0xff]  ;;  %v1680_v51 = vld [vmem:[#allocation2 + $0xe2] sm:$0xff]  ;;  %v4200_v54 = vpack.c.bf16 %v1488_v49, %v1488_v49 }
 0x1a2   : > { %1467 = vst [vmem:[#allocation3 + $0x1a0] sm:$0xf] %v4134_v35  ;;  %1562 = vst [vmem:[#allocation3 + $0x15c] sm:$0xf] %v4102_v33  ;;  %v4231_v58 = vpack.c.bf16 %v1679_v50, %v1679_v50  ;;  %v4232_v59 = vpack.c.bf16 %v1680_v51, %v1680_v51  ;;  %v4879_v18 = vld [vmem:[#allocation3 + $0x1bc] ss:$36 sps:$4 sm:$0xff]  }
 0x1a3   : > { %1753 = vst [vmem:[#allocation3 + $0x140] sm:$0xf] %v4133_v34  ;;  %1754 = vst [vmem:[#allocation3 + $0x164] sm:$0xf] %v4134_v35  ;;  %2858 = vmatmul.mubr.bf16.gmra.mxu1 %v4873_v19  ;;  %v4889_v25 = vld [vmem:[#allocation3 + $0x1fc] ss:$36 sps:$4 sm:$0xff]  }
 0x1a4   : > { %1375 = vst [vmem:[#allocation3 + $0x22c] sm:$0xf] %v4168_v36  ;;  %1662 = vst [vmem:[#allocation3 + $0x1f0] sm:$0xf] %v4168_v36  ;;  %2865 = vmatprep.mubr.bf16.mxu1 %v4877_v21  ;;  %v4898_v26 = vld [vmem:[#allocation3 + $0x200] ss:$36 sps:$4 sm:$0xff]  }
 0x1a5   : > { %1567 = vst [vmem:[#allocation3 + $0x210] sm:$0xf] %v4199_v41  ;;  %1278 = vst [vmem:[#allocation3 + $0x204] sm:$0xf] %v4151_v45  ;;  %v4907_v27 = vld [vmem:[#allocation3 + $0x1c] ss:$36 sps:$4 sm:$0xff]  }
 0x1a6   : > { %1565 = vst [vmem:[#allocation3 + $0x1c8] sm:$0xf] %v4151_v45  ;;  %v1199_v60 = vld [vmem:[#allocation2 + $0xc8] sm:$0xff]  ;;  %1568 = vst [vmem:[#allocation3 + $0x234] sm:$0xf] %v4200_v54  ;;  %v4915_v33 = vld [vmem:[#allocation9 + $0x230] sm:$0xff]  }
 0x1a7   : > { %v1390_v61 = vld [vmem:[#allocation2 + $0xc2] sm:$0xff]  ;;  %v1391_v62 = vld [vmem:[#allocation2 + $0xca] sm:$0xff]  ;;  %1759 = vst [vmem:[#allocation3 + $0x218] sm:$0xf] %v4231_v58  ;;  %1760 = vst [vmem:[#allocation3 + $0x23c] sm:$0xf] %v4232_v59  ;;  %v4152_v63 = vpack.c.bf16 %v1199_v60, %v1199_v60 }
 0x1a8   : > { %v4183_v29 = vpack.c.bf16 %v1390_v61, %v1390_v61  ;;  %v4184_v0 = vpack.c.bf16 %v1391_v62, %v1391_v62  ;;  %v4868_v15 = vld [vmem:[#allocation3 + $0x174] ss:$36 sps:$4 sm:$0xff]   ;;  %v4913_v52 = vld [vmem:[#allocation3 + $0x64] ss:$36 sps:$4 sm:$0xff]   ;;  %v4911_v34 = vld [vmem:[#allocation3 + $0x5c] ss:$36 sps:$4 sm:$0xff]  }
 0x1a9   : > { %1279 = vst [vmem:[#allocation3 + $0x228] sm:$0xf] %v4152_v63  ;;  %1566 = vst [vmem:[#allocation3 + $0x1ec] sm:$0xf] %v4152_v63  ;;  %2954 = vmatprep.mubr.bf16.mxu0 %v4868_v15  ;;  %v4886_v22 = vld [vmem:[#allocation3 + $0x1b8] ss:$36 sps:$4 sm:$0xff]  }
 0x1aa   : > { %1470 = vst [vmem:[#allocation3 + $0x20c] sm:$0xf] %v4183_v29  ;;  %1471 = vst [vmem:[#allocation3 + $0x230] sm:$0xf] %v4184_v0  ;;  %2955 = vmatmul.mubr.bf16.gmra.mxu0 %v4874_v57  ;;  %v4885_v24 = vld [vmem:[#allocation3 + $0x1b0] ss:$36 sps:$4 sm:$0xff]  }
 0x1ab   : > { %1757 = vst [vmem:[#allocation3 + $0x1d0] sm:$0xf] %v4183_v29  ;;  %1758 = vst [vmem:[#allocation3 + $0x1f4] sm:$0xf] %v4184_v0  ;;  %2962 = vmatprep.mubr.bf16.mxu0 %v4879_v18  ;;  %2866 = vmatmul.mubr.bf16.gmra.mxu1 %v4885_v24  ;;  %v4897_v7 = vld [vmem:[#allocation3 + $0x1f8] ss:$36 sps:$4 sm:$0xff]  }
 0x1ac   : > { %2873 = vmatprep.mubr.bf16.mxu1 %v4889_v25  ;;  %v4903_v30 = vld [vmem:[#allocation3 + $0x14] ss:$36 sps:$4 sm:$0xff]   ;;  %v4922_v35 = vld [vmem:[#allocation9 + $0x228] sm:$0xff]   ;;  %v4917_v36 = vld [vmem:[#allocation3 + $0x60] ss:$36 sps:$4 sm:$0xff]  }
 0x1ad   : > { %v4905_v31 = vld [vmem:[#allocation3 + $0x18] ss:$36 sps:$4 sm:$0xff]   ;;  %v4901_v32 = vld [vmem:[#allocation3 + $0x10] ss:$36 sps:$4 sm:$0xff]   ;;  %v4918_v20 = vld [vmem:[#allocation3 + $0xa4] ss:$36 sps:$4 sm:$0xff]  }
 0x1ae   : > { %v4920_v53 = vld [vmem:[#allocation3 + $0xac] ss:$36 sps:$4 sm:$0xff]   ;;  %v4916_v38 = vld [vmem:[#allocation3 + $0x58] ss:$36 sps:$4 sm:$0xff]   ;;  %v4923_v43 = vld [vmem:[#allocation3 + $0xa0] ss:$36 sps:$4 sm:$0xff]  }
 0x1af   : > { %v4936_v41 = vld [vmem:[#allocation9 + $0x218] sm:$0xff]   ;;  %v4924_v40 = vld [vmem:[#allocation3 + $0xa8] ss:$36 sps:$4 sm:$0xff]   ;;  %v4931_v28 = vld [vmem:[#allocation3 + $0xf0] ss:$36 sps:$4 sm:$0xff]  }
 0x1b0   : > { %v4891_v23 = vld [vmem:[#allocation3 + $0x204] ss:$36 sps:$4 sm:$0xff]   ;;  %v4927_v42 = vld [vmem:[#allocation3 + $0xf4] ss:$36 sps:$4 sm:$0xff]   ;;  %v4925_v45 = vld [vmem:[#allocation3 + $0xec] ss:$36 sps:$4 sm:$0xff]  }
 0x1b1   : > { %v4934_v47 = vld [vmem:[#allocation3 + $0x13c] ss:$36 sps:$4 sm:$0xff]   ;;  %v4930_v48 = vld [vmem:[#allocation3 + $0xe8] ss:$36 sps:$4 sm:$0xff]   ;;  %v4932_v50 = vld [vmem:[#allocation3 + $0x134] ss:$36 sps:$4 sm:$0xff]  }
 0x1b2   : > { %2963 = vmatmul.mubr.bf16.gmra.mxu0 %v4886_v22  ;;  %v4957_v49 = vld [vmem:[#allocation9 + $0x200] sm:$0xff]   ;;  %v4938_v51 = vld [vmem:[#allocation3 + $0x138] ss:$36 sps:$4 sm:$0xff]   ;;  %v4937_v54 = vld [vmem:[#allocation3 + $0x130] ss:$36 sps:$4 sm:$0xff]  }
 0x1b3   : > { %2970 = vmatprep.mubr.bf16.mxu0 %v4891_v23  ;;  %2874 = vmatmul.mubr.bf16.gmra.mxu1 %v4897_v7  ;;  %v4941_v37 = vld [vmem:[#allocation3 + $0x184] ss:$36 sps:$4 sm:$0xff]   ;;  %v4939_v58 = vld [vmem:[#allocation3 + $0x17c] ss:$36 sps:$4 sm:$0xff]   ;;  %v4948_v60 = vld [vmem:[#allocation3 + $0x1cc] ss:$36 sps:$4 sm:$0xff]  }
 0x1b4   : > { %3011 = vmatprep.mubr.bf16.mxu1 %v4903_v30  ;;  %v4945_v59 = vld [vmem:[#allocation3 + $0x180] ss:$36 sps:$4 sm:$0xff]   ;;  %v4944_v61 = vld [vmem:[#allocation3 + $0x178] ss:$36 sps:$4 sm:$0xff]   ;;  %v4952_v63 = vld [vmem:[#allocation3 + $0x1c8] ss:$36 sps:$4 sm:$0xff]  }
 0x1b5   : > { %v4946_v62 = vld [vmem:[#allocation3 + $0x1c4] ss:$36 sps:$4 sm:$0xff]   ;;  %v4955_v29 = vld [vmem:[#allocation3 + $0x214] ss:$36 sps:$4 sm:$0xff]   ;;  %v4953_v1 = vld [vmem:[#allocation3 + $0x20c] ss:$36 sps:$4 sm:$0xff]  }
 0x1b6   : > { %v4951_v0 = vld [vmem:[#allocation3 + $0x1c0] ss:$36 sps:$4 sm:$0xff]   ;;  %v4959_v2 = vld [vmem:[#allocation3 + $0x210] ss:$36 sps:$4 sm:$0xff]   ;;  %v4958_v3 = vld [vmem:[#allocation3 + $0x208] ss:$36 sps:$4 sm:$0xff]  }
 0x1b7   : > { %v4960_v4 = vld [vmem:[#allocation3 + $0x20] ss:$36 sps:$4 sm:$0xff]   ;;  %v4961_v5 = vld [vmem:[#allocation3 + $0x68] ss:$36 sps:$4 sm:$0xff]   ;;  %v4962_v6 = vld [vmem:[#allocation3 + $0xb0] ss:$36 sps:$4 sm:$0xff]  }
 0x1b8   : > { %v4963_v55 = vld [vmem:[#allocation3 + $0xf8] ss:$36 sps:$4 sm:$0xff]   ;;  %v4964_v8 = vld [vmem:[#allocation3 + $0x140] ss:$36 sps:$4 sm:$0xff]   ;;  %v4965_v9 = vld [vmem:[#allocation3 + $0x188] ss:$36 sps:$4 sm:$0xff]  }
 0x1b9   : > { %v4966_v10 = vld [vmem:[#allocation3 + $0x1d0] ss:$36 sps:$4 sm:$0xff]   ;;  %v4967_v56 = vld [vmem:[#allocation3 + $0x218] ss:$36 sps:$4 sm:$0xff]   ;;  %v4971_v18 = vld [vmem:[#allocation10 + $0x20] sm:$0xff]  }
 0x1ba   : > { %2971 = vmatmul.mubr.bf16.gmra.mxu0 %v4898_v26  ;;  %v4969_v12 = vld [vmem:[#allocation10 + $0x30] sm:$0xff]  }
 0x1bb   : > { %3108 = vmatprep.mubr.bf16.mxu0 %v4907_v27  ;;  %3012 = vmatmul.mubr.bf16.vlgmr.msra.gmra.mxu1 %v4901_v32 }
 0x1bc   : > { %4577 = vmatpush3.bf16.msra.mxu1 %v4910_v13  ;;  %3019 = vmatprep.mubr.bf16.mxu1 %v4911_v34  ;;  %v4970_v13 = vld [vmem:[#allocation10 + $0x28] sm:$0xff]  }
 0x1bd   : > { %4578 = vmatprep.subr.bf16.mxu1 %v4915_v33 }
 0x1c0   : > { %4579 = vmatpush3.bf16.msra.mxu1 %v4915_v33  ;;  %v4972_v33 = vld [vmem:[#allocation10 + $0x18] sm:$0xff]  }
 0x1c1   : > { %4580 = vmatprep.subr.bf16.mxu1 %v4922_v35 }
 0x1c2   : > { %3109 = vmatmul.mubr.bf16.vlgmr.msra.gmra.mxu0 %v4905_v31 }
 0x1c3   : > { %3116 = vmatprep.mubr.bf16.mxu0 %v4913_v52  ;;  %3020 = vmatmul.mubr.bf16.gmra.mxu1 %v4916_v38 }
 0x1c4   : > { %3027 = vmatprep.mubr.bf16.mxu1 %v4918_v20  ;;  %4581 = vmatpush3.bf16.msra.mxu1 %v4922_v35 }
 0x1c5   : > { %4582 = vmatprep.subr.bf16.mxu1 %v4929_v39  ;;  %4609 = vmatpush3.bf16.msra.mxu0 %v4968_v11 }
 0x1c6   : > { %4610 = vmatprep.subr.bf16.mxu0 %v4969_v12 }
 0x1c8   : > { %4583 = vmatpush3.bf16.msra.mxu1 %v4929_v39 }
 0x1c9   : > { %4584 = vmatprep.subr.bf16.mxu1 %v4936_v41  ;;  %4611 = vmatpush3.bf16.msra.mxu0 %v4969_v12 }
 0x1ca   : > { %3117 = vmatmul.mubr.bf16.gmra.mxu0 %v4917_v36  ;;  %4612 = vmatprep.subr.bf16.mxu0 %v4970_v13 }
 0x1cb   : > { %3124 = vmatprep.mubr.bf16.mxu0 %v4920_v53  ;;  %3028 = vmatmul.mubr.bf16.gmra.mxu1 %v4923_v43 }
 0x1cc   : > { %3035 = vmatprep.mubr.bf16.mxu1 %v4925_v45  ;;  %4585 = vmatpush3.bf16.msra.mxu1 %v4936_v41  ;;  %v4973_v41 = vld [vmem:[#allocation10 + $0x10] sm:$0xff]  }
 0x1cd   : > { %4586 = vmatprep.subr.bf16.mxu1 %v4943_v44  ;;  %4613 = vmatpush3.bf16.msra.mxu0 %v4970_v13 }
 0x1ce   : > { %4614 = vmatprep.subr.bf16.mxu0 %v4971_v18 }
 0x1d0   : > { %4587 = vmatpush3.bf16.msra.mxu1 %v4943_v44 }
 0x1d1   : > { %4588 = vmatprep.subr.bf16.mxu1 %v4950_v46  ;;  %4615 = vmatpush3.bf16.msra.mxu0 %v4971_v18 }
 0x1d2   : > { %3125 = vmatmul.mubr.bf16.gmra.mxu0 %v4924_v40  ;;  %4616 = vmatprep.subr.bf16.mxu0 %v4972_v33 }
 0x1d3   : > { %3132 = vmatprep.mubr.bf16.mxu0 %v4927_v42  ;;  %3036 = vmatmul.mubr.bf16.gmra.mxu1 %v4930_v48 }
 0x1d4   : > { %3043 = vmatprep.mubr.bf16.mxu1 %v4932_v50  ;;  %4589 = vmatpush3.bf16.msra.mxu1 %v4950_v46 }
 0x1d5   : > { %4590 = vmatprep.subr.bf16.mxu1 %v4957_v49  ;;  %4617 = vmatpush3.bf16.msra.mxu0 %v4972_v33 }
 0x1d6   : > { %4618 = vmatprep.subr.bf16.mxu0 %v4973_v41 }
 0x1d8   : > { %4591 = vmatpush3.bf16.msra.mxu1 %v4957_v49 }
 0x1d9   : > { %4640 = vmatprep.subr.bf16.mxu1 %v4968_v11  ;;  %4619 = vmatpush3.bf16.msra.mxu0 %v4973_v41 }
 0x1da   : > { %3133 = vmatmul.mubr.bf16.gmra.mxu0 %v4931_v28 }
 0x1db   : > { %3140 = vmatprep.mubr.bf16.mxu0 %v4934_v47  ;;  %3044 = vmatmul.mubr.bf16.gmra.mxu1 %v4937_v54  ;;  %v4974_v47 = vld [vmem:[#allocation10 + $0x8] sm:$0xff]  }
 0x1dc   : > { %3051 = vmatprep.mubr.bf16.mxu1 %v4939_v58  ;;  %4620 = vmatprep.subr.bf16.mxu0 %v4974_v47 }
 0x1dd   : > { %4621 = vmatpush3.bf16.msra.mxu0 %v4974_v47 }
 0x1e2   : > { %3141 = vmatmul.mubr.bf16.gmra.mxu0 %v4938_v51 }
 0x1e3   : > { %3148 = vmatprep.mubr.bf16.mxu0 %v4941_v37  ;;  %3052 = vmatmul.mubr.bf16.gmra.mxu1 %v4944_v61  ;;  %v4975_v61 = vld [vmem:[#allocation10] sm:$0xff]  }
 0x1e4   : > { %3059 = vmatprep.mubr.bf16.mxu1 %v4946_v62  ;;  %4622 = vmatprep.subr.bf16.mxu0 %v4975_v61 }
 0x1e5   : > { %4623 = vmatpush3.bf16.msra.mxu0 %v4975_v61 }
 0x1ea   : > { %3149 = vmatmul.mubr.bf16.gmra.mxu0 %v4945_v59 }
 0x1eb   : > { %3156 = vmatprep.mubr.bf16.mxu0 %v4948_v60  ;;  %3060 = vmatmul.mubr.bf16.gmra.mxu1 %v4951_v0 }
 0x1ec   : > { %3067 = vmatprep.mubr.bf16.mxu1 %v4953_v1 }
 0x1f2   : > { %3157 = vmatmul.mubr.bf16.gmra.mxu0 %v4952_v63 }
 0x1f3   : > { %3164 = vmatprep.mubr.bf16.mxu0 %v4955_v29  ;;  %3068 = vmatmul.mubr.bf16.gmra.mxu1 %v4958_v3 }
 0x1f4   : > { %4592 = vmatprep.mubr.bf16.mxu1 %v4960_v4 }
 0x1fa   : > { %3165 = vmatmul.mubr.bf16.gmra.mxu0 %v4959_v2 }
 0x1fb   : > { %4593 = vmatmul.mubr.bf16.vlgmr.msra.gmra.mxu1 %v4961_v5 }
 0x1fc   : > { %4596 = vmatprep.mubr.bf16.mxu1 %v4962_v6  ;;  %4648 = vmatpush3.bf16.msra.mxu1 %v4968_v11 }
 0x1fd   : > { %4641 = vmatprep.subr.bf16.mxu1 %v4969_v12 }
 0x200   : > { %4649 = vmatpush3.bf16.msra.mxu1 %v4969_v12 }
 0x201   : > { %4642 = vmatprep.subr.bf16.mxu1 %v4970_v13 }
 0x203   : > { %4597 = vmatmul.mubr.bf16.gmra.mxu1 %v4963_v55 }
 0x204   : > { %4600 = vmatprep.mubr.bf16.mxu1 %v4964_v8  ;;  %4650 = vmatpush3.bf16.msra.mxu1 %v4970_v13 }
 0x205   : > { %4643 = vmatprep.subr.bf16.mxu1 %v4971_v18 }
 0x208   : > { %4651 = vmatpush3.bf16.msra.mxu1 %v4971_v18 }
 0x209   : > { %4644 = vmatprep.subr.bf16.mxu1 %v4972_v33 }
 0x20b   : > { %4601 = vmatmul.mubr.bf16.gmra.mxu1 %v4965_v9 }
 0x20c   : > { %4604 = vmatprep.mubr.bf16.mxu1 %v4966_v10  ;;  %4652 = vmatpush3.bf16.msra.mxu1 %v4972_v33 }
 0x20d   : > { %4645 = vmatprep.subr.bf16.mxu1 %v4973_v41 }
 0x210   : > { %4653 = vmatpush3.bf16.msra.mxu1 %v4973_v41 }
 0x211   : > { %4646 = vmatprep.subr.bf16.mxu1 %v4974_v47 }
 0x213   : > { %4605 = vmatmul.mubr.bf16.gmra.mxu1 %v4967_v56 }
 0x214   : > { %4654 = vmatpush3.bf16.msra.mxu1 %v4974_v47 }
 0x215   : > { %4647 = vmatprep.subr.bf16.mxu1 %v4975_v61 }
 0x218   : > { %4655 = vmatpush3.bf16.msra.mxu1 %v4975_v61 }
 0x231   : > { %v4332_v14 = vpop.f32.mrf.mxu0 }
 0x233   : > { %v4333_v16 = vpop.f32.mrf.mxu0 }
 0x234   : > { %v4334_v17 = vadd.f32 %v4333_v16, %v4332_v14 }
 0x235   : > { %v4335_v19 = vpop.f32.mrf.mxu0 }
 0x237   : > { %v4336_v23 = vpop.f32.mrf.mxu0 }
 0x238   : > { %v4268_v15 = vpop.f32.mrf.mxu1  ;;  %v4337_v25 = vadd.f32 %v4336_v23, %v4335_v19 }
 0x23a   : > { %v4269_v57 = vpop.f32.mrf.mxu1 }
 0x23b   : > { %v4270_v21 = vadd.f32 %v4269_v57, %v4268_v15 }
 0x23c   : > { %v4271_v22 = vpop.f32.mrf.mxu1 }
 0x23d   : > { %v5667_v24 = vadd.f32 %v4334_v17, %v4270_v21 }
 0x23e   : > { %v4272_v26 = vpop.f32.mrf.mxu1 }
 0x23f   : > { %v4273_v7 = vadd.f32 %v4272_v26, %v4271_v22 }
 0x240   : > { %v4274_v30 = vpop.f32.mrf.mxu1 }
 0x241   : > { %v5669_v52 = vadd.f32 %v4337_v25, %v4273_v7 }
 0x242   : > { %v4275_v34 = vpop.f32.mrf.mxu1 }
 0x243   : > { %v4276_v36 = vadd.f32 %v4275_v34, %v4274_v30 }
 0x244   : > { %v4338_v27 = vpop.f32.mrf.mxu0  ;;  %v4277_v53 = vpop.f32.mrf.mxu1 }
 0x246   : > { %v4339_v31 = vpop.f32.mrf.mxu0  ;;  %v4278_v40 = vpop.f32.mrf.mxu1 }
 0x247   : > { %v4340_v32 = vadd.f32 %v4339_v31, %v4338_v27  ;;  %v4279_v43 = vadd.f32 %v4278_v40, %v4277_v53 }
 0x248   : > { %v4341_v35 = vpop.f32.mrf.mxu0 }
 0x249   : > { %v5671_v39 = vadd.f32 %v4340_v32, %v4276_v36  ;;  %v4280_v44 = vpop.f32.mrf.mxu1 }
 0x24a   : > { %v4342_v38 = vpop.f32.mrf.mxu0 }
 0x24b   : > { %v4343_v20 = vadd.f32 %v4342_v38, %v4341_v35  ;;  %v4281_v48 = vpop.f32.mrf.mxu1 }
 0x24c   : > { %v4282_v50 = vadd.f32 %v4281_v48, %v4280_v44 }
 0x24d   : > { %v5673_v46 = vadd.f32 %v4343_v20, %v4279_v43  ;;  %v4283_v51 = vpop.f32.mrf.mxu1 }
 0x24e   : > { %v4344_v42 = vpop.f32.mrf.mxu0 }
 0x24f   : > { %v4284_v59 = vpop.f32.mrf.mxu1 }
 0x250   : > { %v4345_v45 = vpop.f32.mrf.mxu0  ;;  %v4285_v62 = vadd.f32 %v4284_v59, %v4283_v51 }
 0x251   : > { %v4346_v28 = vadd.f32 %v4345_v45, %v4344_v42 }
 0x252   : > { %v4347_v49 = vpop.f32.mrf.mxu0 }
 0x253   : > { %v5675_v54 = vadd.f32 %v4346_v28, %v4282_v50  ;;  %v4286_v63 = vpop.f32.mrf.mxu1 }
 0x254   : > { %v4348_v37 = vpop.f32.mrf.mxu0 }
 0x255   : > { %v4349_v58 = vadd.f32 %v4348_v37, %v4347_v49  ;;  %v4287_v2 = vpop.f32.mrf.mxu1 }
 0x256   : > { %v4288_v4 = vadd.f32 %v4287_v2, %v4286_v63 }
 0x257   : > { %v5677_v0 = vadd.f32 %v4349_v58, %v4285_v62  ;;  %v4289_v5 = vpop.f32.mrf.mxu1 }
 0x258   : > { %v4350_v60 = vpop.f32.mrf.mxu0 }
 0x259   : > { %v4290_v9 = vpop.f32.mrf.mxu1 }
 0x25a   : > { %v4351_v29 = vpop.f32.mrf.mxu0  ;;  %v4291_v56 = vadd.f32 %v4290_v9, %v4289_v5 }
 0x25b   : > { %v4352_v1 = vadd.f32 %v4351_v29, %v4350_v60  ;;  %v4292_v11 = vpop.f32.mrf.mxu1 }
 0x25c   : > { %v4353_v3 = vpop.f32.mrf.mxu0 }
 0x25d   : > { %v5679_v55 = vadd.f32 %v4352_v1, %v4288_v4  ;;  %v4293_v15 = vpop.f32.mrf.mxu1 }
 0x25e   : > { %v4354_v6 = vpop.f32.mrf.mxu0  ;;  %v4294_v17 = vadd.f32 %v4293_v15, %v4292_v11 }
 0x25f   : > { %v4355_v8 = vadd.f32 %v4354_v6, %v4353_v3  ;;  %v4295_v18 = vpop.f32.mrf.mxu1 }
 0x260   : > { %v4356_v10 = vpop.f32.mrf.mxu0 }
 0x261   : > { %v5681_v13 = vadd.f32 %v4355_v8, %v4291_v56  ;;  %v4296_v22 = vpop.f32.mrf.mxu1 }
 0x262   : > { %v4357_v12 = vpop.f32.mrf.mxu0  ;;  %v4297_v25 = vadd.f32 %v4296_v22, %v4295_v18 }
 0x263   : > { %v4358_v14 = vadd.f32 %v4357_v12, %v4356_v10  ;;  %v4298_v26 = vpop.f32.mrf.mxu1 }
 0x264   : > { %v4359_v16 = vpop.f32.mrf.mxu0 }
 0x265   : > { %v5683_v19 = vadd.f32 %v4358_v14, %v4294_v17  ;;  %v4299_v31 = vpop.f32.mrf.mxu1 }
 0x266   : > { %v4360_v57 = vpop.f32.mrf.mxu0  ;;  %v4300_v33 = vadd.f32 %v4299_v31, %v4298_v26 }
 0x267   : > { %6082 = vst [vmem:[#allocation25_spill] sm:$0xff] %v5683_v19  ;;  %v4361_v21 = vadd.f32 %v4360_v57, %v4359_v16  ;;  %v4301_v34 = vpop.f32.mrf.mxu1 }
 0x269   : > { %v5685_v7 = vadd.f32 %v4361_v21, %v4297_v25  ;;  %v4302_v38 = vpop.f32.mrf.mxu1 }
 0x26a   : > { %v4362_v23 = vpop.f32.mrf.mxu0  ;;  %v4303_v41 = vadd.f32 %v4302_v38, %v4301_v34 }
 0x26b   : > { %6083 = vst [vmem:[#allocation26_spill] sm:$0xff] %v5685_v7  ;;  %v4304_v40 = vpop.f32.mrf.mxu1 }
 0x26c   : > { %v4363_v27 = vpop.f32.mrf.mxu0 }
 0x26d   : > { %v4364_v30 = vadd.f32 %v4363_v27, %v4362_v23  ;;  %v4305_v45 = vpop.f32.mrf.mxu1 }
 0x26e   : > { %v4365_v32 = vpop.f32.mrf.mxu0  ;;  %v4306_v47 = vadd.f32 %v4305_v45, %v4304_v40 }
 0x26f   : > { %v5687_v36 = vadd.f32 %v4364_v30, %v4300_v33  ;;  %v4307_v48 = vpop.f32.mrf.mxu1 }
 0x270   : > { %v4366_v35 = vpop.f32.mrf.mxu0 }
 0x271   : > { %v4367_v53 = vadd.f32 %v4366_v35, %v4365_v32  ;;  %v4308_v37 = vpop.f32.mrf.mxu1 }
 0x272   : > { %v4368_v20 = vpop.f32.mrf.mxu0  ;;  %v4309_v59 = vadd.f32 %v4308_v37, %v4307_v48 }
 0x273   : > { %v5689_v43 = vadd.f32 %v4367_v53, %v4303_v41  ;;  %v4310_v60 = vpop.f32.mrf.mxu1 }
 0x274   : > { %v4369_v42 = vpop.f32.mrf.mxu0 }
 0x275   : > { %6084 = vst [vmem:[#allocation27_spill] sm:$0xff] %v5689_v43  ;;  %v4370_v44 = vadd.f32 %v4369_v42, %v4368_v20  ;;  %v4311_v29 = vpop.f32.mrf.mxu1 }
 0x276   : > { %v4371_v28 = vpop.f32.mrf.mxu0  ;;  %v4312_v2 = vadd.f32 %v4311_v29, %v4310_v60 }
 0x277   : > { %v5691_v50 = vadd.f32 %v4370_v44, %v4306_v47  ;;  %v4313_v3 = vpop.f32.mrf.mxu1 }
 0x278   : > { %v4372_v49 = vpop.f32.mrf.mxu0 }
 0x279   : > { %6085 = vst [vmem:[#allocation28_spill] sm:$0xff] %v5691_v50  ;;  %v4373_v51 = vadd.f32 %v4372_v49, %v4371_v28  ;;  %v4314_v6 = vpop.f32.mrf.mxu1 }
 0x27a   : > { %v4374_v58 = vpop.f32.mrf.mxu0  ;;  %v5703_v9 = vadd.f32 %v4314_v6, %v4313_v3 }
 0x27b   : > { %v5693_v62 = vadd.f32 %v4373_v51, %v4309_v59  ;;  %v4396_v10 = vpop.f32.mrf.mxu1 }
 0x27c   : > { %v4375_v61 = vpop.f32.mrf.mxu0 }
 0x27d   : > { %6086 = vst [vmem:[#allocation29_spill] sm:$0xff] %v5693_v62  ;;  %v4376_v63 = vadd.f32 %v4375_v61, %v4374_v58  ;;  %v4397_v11 = vpop.f32.mrf.mxu1 }
 0x27e   : > { %v5695_v1 = vpop.f32.mrf.mxu0  ;;  %v4398_v14 = vadd.f32 %v4397_v11, %v4396_v10 }
 0x27f   : > { %v5699_v5 = vadd.f32 %v4376_v63, %v4312_v2  ;;  %v4399_v15 = vpop.f32.mrf.mxu1 }
 0x280   : > { %v5697_v4 = vpop.f32.mrf.mxu0  ;;  %v5712_v17 = vadd.f32 %v4398_v14, %v5667_v24 }
 0x281   : > { %6087 = vst [vmem:[#allocation30_spill] sm:$0xff] %v5699_v5  ;;  %v4400_v18 = vpop.f32.mrf.mxu1 }
 0x282   : > { %v5701_v8 = vpop.f32.mrf.mxu0 }
 0x283   : > { %v4402_v21 = vpop.f32.mrf.mxu1 }
 0x284   : > { %v5705_v56 = vpop.f32.mrf.mxu0 }
 0x285   : > { %v4403_v23 = vpop.f32.mrf.mxu1 }
 0x286   : > { %v5707_v12 = vpop.f32.mrf.mxu0 }
 0x287   : > { %v4405_v26 = vpop.f32.mrf.mxu1 }
 0x288   : > { %v5709_v16 = vpop.f32.mrf.mxu0 }
 0x289   : > { %v4406_v30 = vpop.f32.mrf.mxu1 }
 0x28a   : > { %v4466_v57 = vpop.f32.mrf.mxu0 }
 0x28b   : > { %v4408_v32 = vpop.f32.mrf.mxu1 }
 0x28c   : > { %v4467_v22 = vpop.f32.mrf.mxu0 }
 0x28d   : > { %v4409_v34 = vpop.f32.mrf.mxu1 }
 0x28e   : > { %v4469_v25 = vpop.f32.mrf.mxu0 }
 0x28f   : > { %v4411_v53 = vpop.f32.mrf.mxu1 }
 0x290   : > { %v4470_v27 = vpop.f32.mrf.mxu0 }
 0x291   : > { %v4412_v38 = vpop.f32.mrf.mxu1 }
 0x292   : > { %v5714_v31 = vpop.f32.mrf.mxu0 }
 0x293   : > { %v4414_v41 = vpop.f32.mrf.mxu1 }
 0x294   : > { %v5716_v33 = vpop.f32.mrf.mxu0 }
 0x295   : > { %v4415_v42 = vpop.f32.mrf.mxu1 }
 0x296   : > { %v5718_v35 = vpop.f32.mrf.mxu0 }
 0x297   : > { %v4417_v45 = vpop.f32.mrf.mxu1 }
 0x298   : > { %v5720_v24 = vpop.f32.mrf.mxu0 }
 0x299   : > { %v4418_v47 = vpop.f32.mrf.mxu1 }
 0x29a   : > { %v5722_v20 = vpop.f32.mrf.mxu0 }
 0x29b   : > { %v5732_v49 = vpop.f32.mrf.mxu1 }
 0x29c   : > { %v5724_v40 = vpop.f32.mrf.mxu0 }
 0x29d   : > { %v5736_v37 = vpop.f32.mrf.mxu1 }
 0x29e   : > { %v5726_v44 = vpop.f32.mrf.mxu0 }
 0x29f   : > { %v5740_v59 = vpop.f32.mrf.mxu1 }
 0x2a0   : > { %v5728_v28 = vpop.f32.mrf.mxu0 }
 0x2a1   : > { %v5744_v61 = vpop.f32.mrf.mxu1 }
 0x2a2   : > { %v5730_v48 = vpop.f32.mrf.mxu0 }
 0x2a3   : > { %v4426_v63 = vpop.f32.mrf.mxu1 }
 0x2a4   : > { %v5734_v51 = vpop.f32.mrf.mxu0 }
 0x2a5   : > { %v4427_v2 = vpop.f32.mrf.mxu1 }
 0x2a6   : > { %v5738_v58 = vpop.f32.mrf.mxu0 }
 0x2a7   : > { %6088 = vst [vmem:[#allocation31_spill] sm:$0xff] %v5738_v58  ;;  %v5748_v3 = vpop.f32.mrf.mxu1 }
 0x2a8   : > { %v5742_v60 = vpop.f32.mrf.mxu0 }
 0x2a9   : > { %6089 = vst [vmem:[#allocation32_spill] sm:$0xff] %v5742_v60  ;;  %v5752_v10 = vpop.f32.mrf.mxu1  ;;  %v4404_v60 = vadd.f32 %v4403_v23, %v4402_v21  ;;  %v4462_v21 = vadd.f32 %v5705_v56, %v5701_v8 }
 0x2aa   : > { %v5746_v29 = vpop.f32.mrf.mxu0  ;;  %6092 = vst [vmem:[#allocation35_spill] sm:$0xff] %v5752_v10 }
 0x2ab   : > { %6090 = vst [vmem:[#allocation33_spill] sm:$0xff] %v5746_v29  ;;  %v5754_v11 = vpop.f32.mrf.mxu1  ;;  %v3022_v29 = vadd.f32 %v4404_v60, %v5671_v39  ;;  %v5785_v39 = vld [vmem:[%s6018_s5] ss:$0 sm:$0xff] }
 0x2ac   : > { %v5750_v6 = vpop.f32.mrf.mxu0  ;;  %6093 = vst [vmem:[#allocation36_spill] sm:$0xff] %v5754_v11  ;;  %v4407_v11 = vadd.f32 %v4406_v30, %v4405_v26  ;;  %v3111_v26 = vadd.f32 %v4462_v21, %v5712_v17  ;;  %v6103_v21 = vld [vmem:[#allocation25_spill] sm:$0xff] }
 0x2ad   : > { %6091 = vst [vmem:[#allocation34_spill] sm:$0xff] %v5750_v6  ;;  %v5758_v62 = vpop.f32.mrf.mxu1 }
 0x2ae   : > { %v5756_v14 = vpop.f32.mrf.mxu0  ;;  %6095 = vst [vmem:[#allocation38_spill] sm:$0xff] %v5758_v62  ;;  %v4468_v62 = vadd.f32 %v4467_v22, %v4466_v57  ;;  %v3025_v23 = vadd.f32 %v4407_v11, %v5673_v46  ;;  %v4379_v46 = vadd.f32 %v5697_v4, %v5695_v1  ;;  %v5804_v1 = vld [vmem:[%s6019_s6] ss:$0 sm:$0xff] }
 0x2af   : > { %6094 = vst [vmem:[#allocation37_spill] sm:$0xff] %v5756_v14  ;;  %v5760_v50 = vpop.f32.mrf.mxu1  ;;  %v4401_v14 = vadd.f32 %v4400_v18, %v4399_v15  ;;  %v4471_v18 = vadd.f32 %v4470_v27, %v4469_v25  ;;  %v4419_v27 = vadd.f32 %v4418_v47, %v4417_v45 }
 0x2b0   : > { %6096 = vst [vmem:[#allocation39_spill] sm:$0xff] %v5760_v50  ;;  %v5762_v5 = vpop.f32.mrf.mxu0  ;;  %v4410_v50 = vadd.f32 %v4409_v34, %v4408_v32 }
 0x2b1   : > { %6097 = vst [vmem:[#allocation40_spill] sm:$0xff] %v5762_v5  ;;  %v5764_v43 = vpop.f32.mrf.mxu1  ;;  %v3017_v15 = vadd.f32 %v4401_v14, %v5669_v52  ;;  %v3122_v25 = vadd.f32 %v4471_v18, %v3025_v23 }
 0x2b2   : > { %6098 = vst [vmem:[#allocation41_spill] sm:$0xff] %v5764_v43  ;;  %v5768_v7 = vpop.f32.mrf.mxu0  ;;  %v4416_v43 = vadd.f32 %v4415_v42, %v4414_v41  ;;  %v3030_v8 = vadd.f32 %v4410_v50, %v5675_v54  ;;  %v4480_v54 = vadd.f32 %v5724_v40, %v5722_v20  ;;  %v3041_v40 = vadd.f32 %v4419_v27, %v5681_v13 }
 0x2b3   : > { %v5766_v58 = vpop.f32.mrf.mxu1  ;;  %6100 = vst [vmem:[#allocation43_spill] sm:$0xff] %v5768_v7  ;;  %v3119_v7 = vadd.f32 %v4468_v62, %v3022_v29  ;;  %v4465_v62 = vadd.f32 %v5709_v16, %v5707_v12  ;;  %v5812_v16 = vadd.f32 %v4379_v46, %v5703_v9  ;;  %v4422_v42 = vadd.f32 %v5736_v37, %v5732_v49  ;;  %v6102_v37 = vld [vmem:[#allocation35_spill] sm:$0xff] }
 0x2b4   : > { %6099 = vst [vmem:[#allocation42_spill] sm:$0xff] %v5766_v58  ;;  %v5775_v10 = vpop.f32.mrf.mxu0  ;;  %v3038_v30 = vadd.f32 %v4416_v43, %v5679_v55  ;;  %v4425_v9 = vadd.f32 %v5744_v61, %v5740_v59  ;;  %v4483_v29 = vadd.f32 %v5728_v28, %v5726_v44  ;;  %v4486_v13 = vadd.f32 %v5734_v51, %v5730_v48  ;;  %v6105_v18 = vld [vmem:[#allocation34_spill] sm:$0xff] }
 0x2b5   : > { %v5770_v6 = vpop.f32.mrf.mxu1  ;;  %v3114_v12 = vadd.f32 %v4465_v62, %v3017_v15  ;;  %v4431_v59 = vadd.f32 %v6102_v37, %v5748_v3  ;;  %v3046_v23 = vadd.f32 %v4422_v42, %v6103_v21  ;;  %v6104_v15 = vld [vmem:[#allocation33_spill] sm:$0xff]  ;;  %v6106_v51 = vld [vmem:[#allocation26_spill] sm:$0xff] }
 0x2b6   : > { %6101 = vst [vmem:[#allocation44_spill] sm:$0xff] %v5770_v6  ;;  %v4413_v6 = vadd.f32 %v4412_v38, %v4411_v53  ;;  %v5788_v57 = vpop.f32.mrf.mxu0  ;;  %v3135_v41 = vadd.f32 %v4480_v54, %v3038_v30  ;;  %v3138_v28 = vadd.f32 %v4483_v29, %v3041_v40  ;;  %v6117_v37 = vld [vmem:[#allocation30_spill] sm:$0xff] }
 0x2b7   : > { %v5773_v19 = vpop.f32.mrf.mxu1 }
 0x2b8   : > { %v3033_v17 = vadd.f32 %v4413_v6, %v5677_v0  ;;  %v5808_v55 = vpop.f32.mrf.mxu0  ;;  %v4477_v0 = vadd.f32 %v5720_v24, %v5718_v35  ;;  %v6115_v40 = vld [vmem:[#allocation40_spill] sm:$0xff] }
 0x2b9   : > { %v5777_v5 = vpop.f32.mrf.mxu1 }
 0x2ba   : > { %v3130_v47 = vadd.f32 %v4477_v0, %v3033_v17  ;;  %v4502_v35 = vpop.f32.mrf.mxu0  ;;  %v6109_v17 = vld [vmem:[#allocation27_spill] sm:$0xff]  ;;  %v6112_v0 = vld [vmem:[#allocation36_spill] sm:$0xff] }
 0x2bb   : > { %v4594_v58 = vpop.f32.mrf.mxu1  ;;  %v3057_v27 = vadd.f32 %v4431_v59, %v6109_v17 }
 0x2bc   : > { %v3216_v22 = vadd.f32 %v4594_v58, %v3119_v7  ;;  %v4474_v7 = vadd.f32 %v5716_v33, %v5714_v31  ;;  %v4428_v31 = vadd.f32 %v4427_v2, %v4426_v63 }
 0x2bd   : > { %v3207_v56 = vpop.f32.mrf.mxu1  ;;  %v6111_v54 = vld [vmem:[#allocation44_spill] sm:$0xff] }
 0x2be   : > { %v3279_v32 = vmul.f32 %v5785_v39, %v3216_v22  ;;  %v3208_v52 = vadd.f32 %v3207_v56, %v3111_v26  ;;  %v3127_v34 = vadd.f32 %v4474_v7, %v3030_v8  ;;  %v3054_v49 = vadd.f32 %v4428_v31, %v5687_v36  ;;  %v4503_v26 = vpop.f32.mrf.mxu0  ;;  %v6107_v8 = vld [vmem:[#allocation31_spill] sm:$0xff]  ;;  %v6108_v56 = vld [vmem:[#allocation32_spill] sm:$0xff]  ;;  %v6113_v31 = vld [vmem:[#allocation38_spill] sm:$0xff] }
 0x2bf   : > { %v4595_v4 = vpop.f32.mrf.mxu1  ;;  %v4492_v22 = vadd.f32 %v6105_v18, %v6104_v15  ;;  %v3049_v36 = vadd.f32 %v4425_v9, %v6106_v51  ;;  %v4489_v30 = vadd.f32 %v6108_v56, %v6107_v8 }
 0x2c0   : > { %v3277_v43 = vmul.f32 %v5785_v39, %v3208_v52  ;;  %v3219_v50 = vadd.f32 %v4595_v4, %v3122_v25  ;;  %v3302_v53 = vadd.f32 %v5804_v1, %v3279_v32  ;;  %v6110_v4 = vld [vmem:[#allocation42_spill] sm:$0xff]  ;;  %v4505_v9 = vpop.f32.mrf.mxu0 }
 0x2c1   : > { %v3210_v33 = vpop.f32.mrf.mxu1  ;;  %v3151_v7 = vadd.f32 %v4492_v22, %v3054_v49  ;;  %v4504_v22 = vadd.f32 %v4503_v26, %v4502_v35  ;;  %v6121_v26 = vld [vmem:[#allocation29_spill] sm:$0xff] }
 0x2c2   : > { %v3280_v38 = vmul.f32 %v5785_v39, %v3219_v50  ;;  %v3211_v20 = vadd.f32 %v3210_v33, %v3114_v12  ;;  %v3300_v24 = vadd.f32 %v5804_v1, %v3277_v43  ;;  %v3318_v2 = vmax.f32 %v3302_v53, 0.0 }
 0x2c3   : > { %v4598_v45 = vpop.f32.mrf.mxu1  ;;  %v4440_v43 = vadd.f32 %v6111_v54, %v6110_v4  ;;  %v4434_v33 = vadd.f32 %v6113_v31, %v6112_v0  ;;  %v4501_v54 = vadd.f32 %v5808_v55, %v5788_v57 }
 0x2c4   : > { %v3303_v58 = vadd.f32 %v5804_v1, %v3280_v38  ;;  %v3278_v60 = vmul.f32 %v5785_v39, %v3211_v20  ;;  %v3232_v63 = vadd.f32 %v4598_v45, %v3135_v41  ;;  %v3316_v46 = vmax.f32 %v3300_v24, 0.0  ;;  %v6114_v41 = vld [vmem:[#allocation37_spill] sm:$0xff] }
 0x2c5   : > { %v3223_v61 = vpop.f32.mrf.mxu1  ;;  %v3143_v20 = vadd.f32 %v4486_v13, %v3046_v23  ;;  %v4495_v42 = vadd.f32 %v6115_v40, %v6114_v41  ;;  %v3070_v59 = vadd.f32 %v4440_v43, %v6117_v37 }
 0x2c6   : > { %v3319_v6 = vmax.f32 %v3303_v58, 0.0  ;;  %v3301_v11 = vadd.f32 %v5804_v1, %v3278_v60  ;;  %v3224_v14 = vadd.f32 %v3223_v61, %v3127_v34  ;;  %v3283_v44 = vmul.f32 %v5785_v39, %v3232_v63 }
 0x2c7   : > { %v4599_v48 = vpop.f32.mrf.mxu1  ;;  %v3146_v58 = vadd.f32 %v4489_v30, %v3049_v36  ;;  %v4443_v63 = vadd.f32 %v5777_v5, %v5773_v19  ;;  %v6119_v19 = vld [vmem:[#allocation39_spill] sm:$0xff]  ;;  %v6120_v5 = vld [vmem:[#allocation41_spill] sm:$0xff]  ;;  %v3167_v30 = vadd.f32 %v4504_v22, %v3070_v59 }
 0x2c8   : > { %v3333_v3 = vpack.c.bf16 %v3319_v6, %v3318_v2  ;;  %v3317_v62 = vmax.f32 %v3301_v11, 0.0  ;;  %v3281_v32 = vmul.f32 %v5785_v39, %v3224_v14  ;;  %v3235_v52 = vadd.f32 %v4599_v48, %v3138_v28  ;;  %v6118_v11 = vld [vmem:[#allocation28_spill] sm:$0xff] }
 0x2c9   : > { %v3226_v25 = vpop.f32.mrf.mxu1  ;;  %v3306_v34 = vadd.f32 %v5804_v1, %v3283_v44  ;;  %v3154_v6 = vadd.f32 %v4495_v42, %v3057_v27  ;;  %v3062_v14 = vadd.f32 %v4434_v33, %v6118_v11  ;;  %v4437_v18 = vadd.f32 %v6120_v5, %v6119_v19  ;;  %v4506_v44 = vpop.f32.mrf.mxu0  ;;  %v5886_v11 = vld [vmem:[%s6021_s8] ss:$0 sm:$0xff] }
 0x2ca   : > { %v3227_v50 = vadd.f32 %v3226_v25, %v3130_v47  ;;  %v3332_v12 = vpack.c.bf16 %v3317_v62, %v3316_v46  ;;  %v3284_v53 = vmul.f32 %v5785_v39, %v3235_v52  ;;  %v6116_v47 = vld [vmem:[#allocation43_spill] sm:$0xff]  ;;  %v3304_v29 = vadd.f32 %v5804_v1, %v3281_v32 }
 0x2cb   : > { %v4602_v38 = vpop.f32.mrf.mxu1  ;;  %v4498_v60 = vadd.f32 %v5775_v10, %v6116_v47  ;;  %v3322_v21 = vmax.f32 %v3306_v34, 0.0  ;;  %v3073_v51 = vadd.f32 %v4443_v63, %v5812_v16  ;;  %v4507_v32 = vadd.f32 %v4506_v44, %v4505_v9 }
 0x2cc   : > { %v3282_v45 = vmul.f32 %v5785_v39, %v3227_v50  ;;  %v3248_v24 = vadd.f32 %v4602_v38, %v3151_v7  ;;  %4624 = vmatprep.mubr.bf16.mxu0 %v3332_v12  ;;  %v3307_v49 = vadd.f32 %v5804_v1, %v3284_v53  ;;  %v3320_v36 = vmax.f32 %v3304_v29, 0.0 }
 0x2cd   : > { %v3239_v13 = vpop.f32.mrf.mxu1  ;;  %4625 = vmatmul.mubr.bf16.vlgmr.msra.gmra.mxu0 %v3333_v3  ;;  %v3159_v35 = vadd.f32 %v4498_v60, %v3062_v14  ;;  %v3065_v17 = vadd.f32 %v4437_v18, %v6121_v26  ;;  %v3170_v12 = vadd.f32 %v4507_v32, %v3073_v51  ;;  %v5891_v14 = vld [vmem:[%s6122_s4] ss:$0 sm:$0xff] }
 0x2ce   : > { %v3305_v61 = vadd.f32 %v5804_v1, %v3282_v45  ;;  %v3240_v2 = vadd.f32 %v3239_v13, %v3143_v20  ;;  %v3323_v23 = vmax.f32 %v3307_v49, 0.0  ;;  %v3287_v10 = vmul.f32 %v5785_v39, %v3248_v24 }
 0x2cf   : > { %v4603_v15 = vpop.f32.mrf.mxu1  ;;  %v3162_v42 = vadd.f32 %v4501_v54, %v3065_v17 }
 0x2d0   : > { %v3321_v28 = vmax.f32 %v3305_v61, 0.0  ;;  %v3251_v48 = vadd.f32 %v4603_v15, %v3154_v6  ;;  %v3335_v46 = vpack.c.bf16 %v3323_v23, %v3322_v21  ;;  %v3285_v3 = vmul.f32 %v5785_v39, %v3240_v2  ;;  %v4985_v15 = vld [vmem:[%s5429_s28 + $0x8] sm:$0xff]  }
 0x2d1   : > { %v3242_v62 = vpop.f32.mrf.mxu1  ;;  %v3310_v52 = vadd.f32 %v5804_v1, %v3287_v10  ;;  %v3501_v19 = vunpack.c.l.bf16 %v4985_v15 }
 0x2d2   : > { %v3288_v8 = vmul.f32 %v5785_v39, %v3251_v48  ;;  %v3243_v56 = vadd.f32 %v3242_v62, %v3146_v58  ;;  %v3334_v7 = vpack.c.bf16 %v3321_v28, %v3320_v36  ;;  %v3308_v43 = vadd.f32 %v5804_v1, %v3285_v3 }
 0x2d3   : > { %v4606_v25 = vpop.f32.mrf.mxu1  ;;  %v3326_v53 = vmax.f32 %v3310_v52, 0.0  ;;  %v3502_v36 = vunpack.c.h.bf16 %v4985_v15 }
 0x2d4   : > { %v3311_v27 = vadd.f32 %v5804_v1, %v3288_v8  ;;  %v3286_v16 = vmul.f32 %v5785_v39, %v3243_v56  ;;  %v3264_v4 = vadd.f32 %v4606_v25, %v3167_v30  ;;  %4628 = vmatprep.mubr.bf16.mxu1 %v3334_v7  ;;  %v3324_v57 = vmax.f32 %v3308_v43, 0.0  ;;  %v4986_v7 = vld [vmem:[%s5429_s28 + $0x20] sm:$0xff]  }
 0x2d5   : > { %v3255_v50 = vpop.f32.mrf.mxu1  ;;  %4629 = vmatmul.mubr.bf16.vlgmr.msra.gmra.mxu1 %v3335_v46 }
 0x2d6   : > { %v3327_v0 = vmax.f32 %v3311_v27, 0.0  ;;  %v3309_v31 = vadd.f32 %v5804_v1, %v3286_v16  ;;  %v3291_v33 = vmul.f32 %v5785_v39, %v3264_v4  ;;  %v3256_v34 = vadd.f32 %v3255_v50, %v3159_v35  ;;  %v4987_v4 = vld [vmem:[%s5429_s28 + $0x18] sm:$0xff]  }
 0x2d7   : > { %v4607_v38 = vpop.f32.mrf.mxu1  ;;  %v3507_v35 = vunpack.c.l.bf16 %v4986_v7  ;;  %v3505_v54 = vunpack.c.l.bf16 %v4987_v4 }
 0x2d8   : > { %v3325_v20 = vmax.f32 %v3309_v31, 0.0  ;;  %v3289_v41 = vmul.f32 %v5785_v39, %v3256_v34  ;;  %v3267_v40 = vadd.f32 %v4607_v38, %v3170_v12  ;;  %v3337_v9 = vpack.c.bf16 %v3327_v0, %v3326_v53 }
 0x2d9   : > { %v3258_v55 = vpop.f32.mrf.mxu1  ;;  %v3314_v45 = vadd.f32 %v5804_v1, %v3291_v33  ;;  %v3508_v31 = vunpack.c.h.bf16 %v4986_v7  ;;  %v3506_v38 = vunpack.c.h.bf16 %v4987_v4 }
 0x2da   : > { %v3292_v24 = vmul.f32 %v5785_v39, %v3267_v40  ;;  %v3259_v58 = vadd.f32 %v3258_v55, %v3162_v42  ;;  %v3336_v47 = vpack.c.bf16 %v3325_v20, %v3324_v57  ;;  %v3312_v60 = vadd.f32 %v5804_v1, %v3289_v41  ;;  %v4988_v55 = vld [vmem:[%s5429_s28 + $0x30] sm:$0xff]  }
 0x2db   : > { %v3330_v49 = vmax.f32 %v3314_v45, 0.0 }
 0x2dc   : > { %v3315_v63 = vadd.f32 %v5804_v1, %v3292_v24  ;;  %v3290_v29 = vmul.f32 %v5785_v39, %v3259_v58  ;;  %4632 = vmatprep.mubr.bf16.mxu1 %v3336_v47  ;;  %v3328_v59 = vmax.f32 %v3312_v60, 0.0 }
 0x2dd   : > { %4633 = vmatmul.mubr.bf16.gmra.mxu1 %v3337_v9  ;;  %v3511_v9 = vunpack.c.l.bf16 %v4988_v55 }
 0x2de   : > { %v3331_v13 = vmax.f32 %v3315_v63, 0.0  ;;  %v3313_v37 = vadd.f32 %v5804_v1, %v3290_v29  ;;  %v4984_v1 = vld [vmem:[%s5429_s28 + $0x10] sm:$0xff]   ;;  %v4989_v63 = vld [vmem:[%s5429_s28 + $0x28] sm:$0xff]  }
 0x2df   : > { %v3503_v21 = vunpack.c.l.bf16 %v4984_v1  ;;  %v3504_v44 = vunpack.c.h.bf16 %v4984_v1  ;;  %v3509_v29 = vunpack.c.l.bf16 %v4989_v63 }
 0x2e0   : > { %v3329_v61 = vmax.f32 %v3313_v37, 0.0  ;;  %v3339_v2 = vpack.c.bf16 %v3331_v13, %v3330_v49 }
 0x2e2   : > { %v3338_v6 = vpack.c.bf16 %v3329_v61, %v3328_v59 }
 0x2e4   : > { %4636 = vmatprep.mubr.bf16.mxu1 %v3338_v6 }
 0x2e5   : > { %4637 = vmatmul.mubr.bf16.gmra.mxu1 %v3339_v2  ;;  %v3512_v2 = vunpack.c.h.bf16 %v4988_v55 }
 0x38d   : > { %v4626_v39 = vpop.f32.mrf.mxu0 }
 0x38e   : > { %v3526_v23 = vmul.f32 %v4626_v39, %v5886_v11 }
 0x38f   : > { %v3438_v10 = vpop.f32.mrf.mxu0 }
 0x390   : > { %v3549_v5 = vadd.f32 %v5891_v14, %v3526_v23  ;;  %v3524_v18 = vmul.f32 %v5886_v11, %v3438_v10  ;;  %v3510_v10 = vunpack.c.h.bf16 %v4989_v63 }
 0x391   : > { %v4627_v22 = vpop.f32.mrf.mxu0 }
 0x392   : > { %v3565_v28 = vadd.f32 %v3549_v5, %v3503_v21  ;;  %v3547_v48 = vadd.f32 %v5891_v14, %v3524_v18  ;;  %v3527_v51 = vmul.f32 %v4627_v22, %v5886_v11 }
 0x393   : > { %v3441_v46 = vpop.f32.mrf.mxu0 }
 0x394   : > { %v3581_v3 = vmax.f32 %v3565_v28, 0.0  ;;  %v3563_v62 = vadd.f32 %v3547_v48, %v3501_v19  ;;  %v3550_v8 = vadd.f32 %v5891_v14, %v3527_v51  ;;  %v3525_v56 = vmul.f32 %v5886_v11, %v3441_v46 }
 0x395   : > { %v4630_v25 = vpop.f32.mrf.mxu1 }
 0x396   : > { %3597 = vst [vmem:[%s5903_s19 + $0x10] sm:$0xff] %v3581_v3  ;;  %v3579_v30 = vmax.f32 %v3563_v62, 0.0  ;;  %v3566_v32 = vadd.f32 %v3550_v8, %v3504_v44  ;;  %v3548_v52 = vadd.f32 %v5891_v14, %v3525_v56  ;;  %v3530_v26 = vmul.f32 %v4630_v25, %v5886_v11  ;;  %v4990_v44 = vld [vmem:[%s5429_s28 + $0x40] sm:$0xff]   ;;  %v4991_v62 = vld [vmem:[%s5429_s28 + $0x38] sm:$0xff]  }
 0x397   : > { %v3454_v16 = vpop.f32.mrf.mxu1  ;;  %v3515_v28 = vunpack.c.l.bf16 %v4990_v44  ;;  %v3513_v8 = vunpack.c.l.bf16 %v4991_v62  ;;  %v3516_v7 = vunpack.c.h.bf16 %v4990_v44  ;;  %v3514_v4 = vunpack.c.h.bf16 %v4991_v62 }
 0x398   : > { %3595 = vst [vmem:[%s5903_s19] sm:$0xff] %v3579_v30  ;;  %v3582_v17 = vmax.f32 %v3566_v32, 0.0  ;;  %v3564_v27 = vadd.f32 %v3548_v52, %v3502_v36  ;;  %v3553_v43 = vadd.f32 %v5891_v14, %v3530_v26  ;;  %v3528_v50 = vmul.f32 %v5886_v11, %v3454_v16 }
 0x399   : > { %v4631_v0 = vpop.f32.mrf.mxu1 }
 0x39a   : > { %3598 = vst [vmem:[%s5903_s19 + $0x18] sm:$0xff] %v3582_v17  ;;  %v3580_v12 = vmax.f32 %v3564_v27, 0.0  ;;  %v3569_v33 = vadd.f32 %v3553_v43, %v3507_v35  ;;  %v3551_v34 = vadd.f32 %v5891_v14, %v3528_v50  ;;  %v3531_v53 = vmul.f32 %v4631_v0, %v5886_v11 }
 0x39b   : > { %v3457_v20 = vpop.f32.mrf.mxu1 }
 0x39c   : > { %3596 = vst [vmem:[%s5903_s19 + $0x8] sm:$0xff] %v3580_v12  ;;  %v3585_v41 = vmax.f32 %v3569_v33, 0.0  ;;  %v3567_v40 = vadd.f32 %v3551_v34, %v3505_v54  ;;  %v3554_v42 = vadd.f32 %v5891_v14, %v3531_v53  ;;  %v3529_v57 = vmul.f32 %v5886_v11, %v3457_v20 }
 0x39d   : > { %v4634_v45 = vpop.f32.mrf.mxu1 }
 0x39e   : > { %3601 = vst [vmem:[%s5903_s19 + $0x30] sm:$0xff] %v3585_v41  ;;  %v3583_v24 = vmax.f32 %v3567_v40, 0.0  ;;  %v3570_v58 = vadd.f32 %v3554_v42, %v3508_v31  ;;  %v3552_v47 = vadd.f32 %v5891_v14, %v3529_v57  ;;  %v3534_v60 = vmul.f32 %v4634_v45, %v5886_v11 }
 0x39f   : > { %v3470_v49 = vpop.f32.mrf.mxu1 }
 0x3a0   : > { %3599 = vst [vmem:[%s5903_s19 + $0x20] sm:$0xff] %v3583_v24  ;;  %v3586_v13 = vmax.f32 %v3570_v58, 0.0  ;;  %v3568_v37 = vadd.f32 %v3552_v47, %v3506_v38  ;;  %v3557_v59 = vadd.f32 %v5891_v14, %v3534_v60  ;;  %v3532_v61 = vmul.f32 %v5886_v11, %v3470_v49 }
 0x3a1   : > { %v4635_v6 = vpop.f32.mrf.mxu1 }
 0x3a2   : > { %3602 = vst [vmem:[%s5903_s19 + $0x38] sm:$0xff] %v3586_v13  ;;  %v3584_v39 = vmax.f32 %v3568_v37, 0.0  ;;  %v3573_v1 = vadd.f32 %v3557_v59, %v3511_v9  ;;  %v3555_v21 = vadd.f32 %v5891_v14, %v3532_v61  ;;  %v3535_v23 = vmul.f32 %v4635_v6, %v5886_v11 }
 0x3a3   : > { %v3473_v15 = vpop.f32.mrf.mxu1 }
 0x3a4   : > { %3600 = vst [vmem:[%s5903_s19 + $0x28] sm:$0xff] %v3584_v39  ;;  %v3589_v19 = vmax.f32 %v3573_v1, 0.0  ;;  %v3571_v5 = vadd.f32 %v3555_v21, %v3509_v29  ;;  %v3558_v18 = vadd.f32 %v5891_v14, %v3535_v23  ;;  %v3533_v22 = vmul.f32 %v5886_v11, %v3473_v15 }
 0x3a5   : > { %v4638_v48 = vpop.f32.mrf.mxu1 }
 0x3a6   : > { %3605 = vst [vmem:[%s5903_s19 + $0x50] sm:$0xff] %v3589_v19  ;;  %v3587_v51 = vmax.f32 %v3571_v5, 0.0  ;;  %v3574_v36 = vadd.f32 %v3558_v18, %v3512_v2  ;;  %v3556_v46 = vadd.f32 %v5891_v14, %v3533_v22  ;;  %v3538_v3 = vmul.f32 %v4638_v48, %v5886_v11 }
 0x3a7   : > { %v3486_v56 = vpop.f32.mrf.mxu1 }
 0x3a8   : > { %3603 = vst [vmem:[%s5903_s19 + $0x40] sm:$0xff] %v3587_v51  ;;  %v3590_v30 = vmax.f32 %v3574_v36, 0.0  ;;  %v3572_v32 = vadd.f32 %v3556_v46, %v3510_v10  ;;  %v3561_v52 = vadd.f32 %v5891_v14, %v3538_v3  ;;  %v3536_v25 = vmul.f32 %v5886_v11, %v3486_v56 }
 0x3a9   : > { %v4639_v35 = vpop.f32.mrf.mxu1 }
 0x3aa   : > { %3606 = vst [vmem:[%s5903_s19 + $0x58] sm:$0xff] %v3590_v30  ;;  %v3588_v26 = vmax.f32 %v3572_v32, 0.0  ;;  %v3577_v17 = vadd.f32 %v3561_v52, %v3515_v28  ;;  %v3559_v27 = vadd.f32 %v5891_v14, %v3536_v25  ;;  %v3539_v16 = vmul.f32 %v4639_v35, %v5886_v11 }
 0x3ab   : > { %v3489_v54 = vpop.f32.mrf.mxu1 }
 0x3ac   : > { %3604 = vst [vmem:[%s5903_s19 + $0x48] sm:$0xff] %v3588_v26  ;;  %v3593_v43 = vmax.f32 %v3577_v17, 0.0  ;;  %v3575_v50 = vadd.f32 %v3559_v27, %v3513_v8  ;;  %v3562_v12 = vadd.f32 %v5891_v14, %v3539_v16  ;;  %v3537_v0 = vmul.f32 %v5886_v11, %v3489_v54 }
 0x3ae   : > { %3609 = vst [vmem:[%s5903_s19 + $0x70] sm:$0xff] %v3593_v43  ;;  %v3591_v31 = vmax.f32 %v3575_v50, 0.0  ;;  %v3578_v33 = vadd.f32 %v3562_v12, %v3516_v7  ;;  %v3560_v34 = vadd.f32 %v5891_v14, %v3537_v0 }
 0x3b0   : > { %3607 = vst [vmem:[%s5903_s19 + $0x60] sm:$0xff] %v3591_v31  ;;  %v3594_v53 = vmax.f32 %v3578_v33, 0.0  ;;  %v3576_v38 = vadd.f32 %v3560_v34, %v3514_v4 }
 0x3b2   : > { %3610 = vst [vmem:[%s5903_s19 + $0x78] sm:$0xff] %v3594_v53  ;;  %v3592_v11 = vmax.f32 %v3576_v38, 0.0 }
 0x3b4   : > { %3608 = vst [vmem:[%s5903_s19 + $0x68] sm:$0xff] %v3592_v11 }
 0x3b5   : > { %5111 = shalt.err (!%p5108_p7)
}
 0x3b6   : > { %s5112_s12 = scalar_lea.hbm %s5959_s26, 2048  ;;  %s5116_s19 = scalar_lea.hbm %s6125_s30, 8192 }
 0x3b7   : > { %p5113_p6 = scmp.ne.s32.totalorder %s5959_s26, %s5112_s12  ;;  %p5117_p12 = scmp.lt.s32.totalorder %s5959_s26, %s6125_s30 }
 0x3b8   : > { %p5118_p10 = scmp.lt.s32.totalorder %s5116_s19, %s5112_s12 }
 0x3b9   : > { %p5114_p11 = pnand %p5113_p6, %p5393_p13 }
 0x3ba   : > { %p5119_p0 = por %p5118_p10, %p5117_p12 }
 0x3bb   : > { %p5115_p9 = pneg %p5114_p11 }
 0x3bd   : > { %p5120_p1 = pnand %p5119_p0, %p5115_p9 }
 0x3bf   : > { %5123 = shalt.err (!%p5120_p1)
}
 0x3c0   : > { %s5212_s23 = smov 128   ;;  %s5213_s16 = smov 8  }
 0x3c1   : > { %4674 = dma.vmem_to_hbm [thread:$0]  (%p5393_p13), %s5953_s25, 2048, %s5959_s26, %s3612_s22, %s5212_s23, %s5212_s23, %s5213_s16  }
 0x3c2 PF: > { %s6126_s27 = sld [smem:[#allocation20_spill]] }
 0x3c3   : > { %s6127_s11 = sld [smem:[#allocation17_spill]] }
 0x3c4   : > { %s6128_s29 = sld [smem:[#allocation21_spill]] }
 0x3c8   : > { %p4701_p4 = scmp.ge.s32.totalorder %s6126_s27, 2 }
 0x3c9   : > { %s3643_s13 = sand.u32 1, %s6127_s11  }
 0x3ca   : > { %p6129_p8 = scmp.ne.s32.totalorder %s6128_s29, 0  ;;  %s3644_s21 = scalar_lea.sflag [#allocation6], %s3643_s13 }
 0x3cc   : > { %p4691_p3 = pnand %p4701_p4, %p6129_p8 }
 0x3ce   : > { %p4692_p5 = pneg %p4691_p3 }
 0x3d0   : > { %5169 = dma.done.wait (%p4692_p5), %s3644_s21, 2048  }
 0x3d1   : > { %5171 = vsyncadd (%p4692_p5), %s3644_s21, 4294965248  ;;  %s28_s20 = sadd.s32 1, %s6126_s27   ;;  %s6130_s17 = sld [smem:[#allocation19_spill]] }
 0x3d2   : > { %p25_p2 = scmp.ge.s32.totalorder %s28_s20, 6   ;;  %s6131_s9 = sld [smem:[#allocation22_spill]] }
 0x3d3   : > { %s6132_s19 = sld [smem:[#allocation24_spill]]  ;;  %s6133_s13 = smov %s5178_s14 }
 0x3d4   : > { %s6134_s14 = smov %s5182_s15  ;;  %s6135_s15 = smov %s5410_s24 }
 0x3d5   : > { %s6136_s16 = smov %s5194_s18  ;;  %27 = sbr.rel (!%p25_p2) target bundleno = 15 (0xf), region = 119 }
 0x3d8   : > { %s6137_s18 = smov %s6131_s9 }
 0x3da   :  { %3649 = vsyncpa [#allocation5], 1 }
 0x3db   :  { %3651 = vsyncpa [#allocation5 + $0x1], 1 }
 0x3dc   :  { %3652 = vsyncpa [#allocation8], 1 }
 0x3dd   :  { %3653 = vsyncpa [#allocation11], 1 }
 0x3de   :  { %3654 = vsyncpa [#allocation6], 1 }
 0x3df   :  { %3656 = vsyncpa [#allocation6 + $0x1], 1 }

</bundles_post_ra>
